<compile_context>
chip_gen: v5e
topology: v5e:2x2
jax: 0.10.0
libtpu: 0.0.40
codegen_flags: <defaults>
</compile_context>

<pallas_src>
import functools

import jax
import jax.numpy as jnp
from jax import lax
from jax.experimental import pallas as pl
from jax.experimental.pallas import tpu as pltpu


def _round_up(n: int, m: int) -> int:
    return (n + m - 1) // m * m


# ----------------------------------------------------------------------------
# Kernel 1: per-image 3x3 SAME conv (in-kernel halo'd im2col as 9 shifted
# matmuls) + bias + ReLU + global-average-pool partial sums.
# Grid = (B,), batch axis 'parallel' (no cross-step state).
# ----------------------------------------------------------------------------
def conv_gap_kernel(img_ref, cw_ref, cb_ref, part_ref, *, H, W, C):
    slab = img_ref[...]                        # (H+2, W+2, C) bf16: image + 1px halo
    cw = cw_ref[...]                           # (3, 3, C, Cfp) bf16
    HW = H * W
    Cfp = cw.shape[-1]

    # 3x3 conv as 9 statically-shifted window GEMMs, f32 accumulation on MXU.
    acc = jnp.zeros((HW, Cfp), jnp.float32)
    for dr in range(3):
        for dc in range(3):
            win = slab[dr:dr + H, dc:dc + W, :].reshape(HW, C)   # bf16, static slice
            acc = acc + jnp.dot(win, cw[dr, dc],
                                preferred_element_type=jnp.float32)

    y = jnp.maximum(acc + cb_ref[...], 0.0)    # (HW, Cfp) f32

    # GAP partial sums: collapse to (8, Cfp) with pure vreg adds; the final
    # cross-sublane reduce + 1/HW happens once per batch in the finalize kernel.
    if HW % 8 == 0:
        part = jnp.sum(y.reshape(HW // 8, 8, Cfp), axis=0)       # (8, Cfp)
    else:
        part = jnp.pad(jnp.sum(y, axis=0, keepdims=True), ((0, 7), (0, 0)))
    part_ref[...] = part


# ----------------------------------------------------------------------------
# Kernel 2 (tiny finalize): GAP mean -> embed Linear -> BatchNorm1d (batch stats)
# ----------------------------------------------------------------------------
def embed_bn_kernel(part_ref, ew_ref, eb_ref, g_ref, bt_ref, out_ref, *,
                    inv_hw, eps):
    pooled = jnp.sum(part_ref[...], axis=1) * inv_hw             # (B, Cfp) f32
    e = jnp.dot(pooled.astype(ew_ref.dtype), ew_ref[...],
                preferred_element_type=jnp.float32) + eb_ref[...]  # (B, Ep)
    mean = jnp.mean(e, axis=0, keepdims=True)
    var = jnp.mean((e - mean) * (e - mean), axis=0, keepdims=True)  # biased (torch)
    out_ref[...] = g_ref[...] * (e - mean) * lax.rsqrt(var + eps) + bt_ref[...]


# ----------------------------------------------------------------------------
# Params
# ----------------------------------------------------------------------------
def init_params(key, c_in, c_feat, embed_size):
    k1, k2, k3, k4 = jax.random.split(key, 4)
    return {
        # stand-in backbone conv, HWIO layout (frozen in the original module)
        "conv_w": 0.1 * jax.random.normal(k1, (3, 3, c_in, c_feat), jnp.float32),
        "conv_b": 0.1 * jax.random.normal(k2, (1, c_feat), jnp.float32),
        # embed = nn.Linear(resnet.fc.in_features, embed_size)
        "embed_w": 0.1 * jax.random.normal(k3, (c_feat, embed_size), jnp.float32),
        "embed_b": 0.1 * jax.random.normal(k4, (1, embed_size), jnp.float32),
        # bn = nn.BatchNorm1d(embed_size): PyTorch default init (weight=1, bias=0)
        "bn_gamma": jnp.ones((1, embed_size), jnp.float32),
        "bn_beta": jnp.zeros((1, embed_size), jnp.float32),
    }


def prepare_params(params):
    """One-time padding to lane-dense 128 multiples + bf16 casts (hoisted out of
    the forward so six pad/cast ops don't run on every call)."""
    c_feat = params["conv_w"].shape[-1]
    embed = params["embed_w"].shape[-1]
    Cfp = _round_up(c_feat, 128)
    Ep = _round_up(embed, 128)
    return {
        "cw": jnp.pad(params["conv_w"],
                      ((0, 0), (0, 0), (0, 0), (0, Cfp - c_feat))).astype(jnp.bfloat16),
        "cb": jnp.pad(params["conv_b"], ((0, 0), (0, Cfp - c_feat))),
        "ew": jnp.pad(params["embed_w"],
                      ((0, Cfp - c_feat), (0, Ep - embed))).astype(jnp.bfloat16),
        "eb": jnp.pad(params["embed_b"], ((0, 0), (0, Ep - embed))),
        "g": jnp.pad(params["bn_gamma"], ((0, 0), (0, Ep - embed))),
        "bt": jnp.pad(params["bn_beta"], ((0, 0), (0, Ep - embed))),
        "embed_size": embed,            # static python int
    }


# ----------------------------------------------------------------------------
# Forward
# ----------------------------------------------------------------------------
def encoder_cnn_forward(prepared, images):
    """images: (B, C_in, H, W) float32 (NCHW) -> (B, embed_size) float32."""
    B, C, H, W = images.shape
    cw, cb = prepared["cw"], prepared["cb"]
    ew, eb, g, bt = prepared["ew"], prepared["eb"], prepared["g"], prepared["bt"]
    Cfp = cw.shape[-1]
    Ep = ew.shape[-1]
    E = prepared["embed_size"]

    # NCHW -> NHWC once, bf16 (halves HBM read), 1-px zero halo for 'SAME'.
    imgs = jnp.pad(jnp.transpose(images, (0, 2, 3, 1)).astype(jnp.bfloat16),
                   ((0, 0), (1, 1), (1, 1), (0, 0)))
    Hp, Wp = H + 2, W + 2

    # VMEM budget estimate: double-buffered image/weight/bias/output blocks plus
    # the (HW, Cfp) f32 conv intermediate; clamp to [32, 64] MiB so the limit is
    # valid on v7x (64 MiB physical) as well as v5e/v6e (128 MiB).
    est = (2 * Hp * Wp * C * 2            # image block, bf16, double-buffered
           + 2 * 9 * C * Cfp * 2          # conv weights, bf16
           + 2 * Cfp * 4                  # conv bias
           + 2 * 8 * Cfp * 4              # output partials block
           + 2 * H * W * Cfp * 4          # conv intermediate + accumulator
           + (4 << 20))                   # headroom
    vmem_limit = int(min(max(est, 32 << 20), 64 << 20))

    conv_kernel = functools.partial(conv_gap_kernel, H=H, W=W, C=C)
    partials = pl.pallas_call(
        conv_kernel,
        out_shape=jax.ShapeDtypeStruct((B, 8, Cfp), jnp.float32),
        grid_spec=pltpu.PrefetchScalarGridSpec(
            num_scalar_prefetch=0,
            grid=(B,),
            in_specs=[
                # squeezed leading batch dim -> kernel ref (Hp, Wp, C)
                pl.BlockSpec((None, Hp, Wp, C), lambda b: (b, 0, 0, 0)),
                pl.BlockSpec((3, 3, C, Cfp), lambda b: (0, 0, 0, 0)),
                pl.BlockSpec((1, Cfp), lambda b: (0, 0)),
            ],
            out_specs=pl.BlockSpec((None, 8, Cfp), lambda b: (b, 0, 0)),
        ),
        compiler_params=pltpu.CompilerParams(
            dimension_semantics=("parallel",),        # megacore-safe on v7x
            vmem_limit_bytes=vmem_limit),
    )(imgs, cw, cb)

    fin_kernel = functools.partial(embed_bn_kernel,
                                   inv_hw=float(1.0 / (H * W)), eps=1e-5)
    out = pl.pallas_call(
        fin_kernel,
        out_shape=jax.ShapeDtypeStruct((B, Ep), jnp.float32),
    )(partials, ew, eb, g, bt)

    return out[:, :E]


# ----------------------------------------------------------------------------
# Pure-JAX reference with matched numerics (bf16 GEMM inputs, f32 accumulation)
# ----------------------------------------------------------------------------
def _reference_forward(params, images):
    imgs = jnp.transpose(images, (0, 2, 3, 1)).astype(jnp.bfloat16)
    y = lax.conv_general_dilated(
        imgs, params["conv_w"].astype(jnp.bfloat16), (1, 1), "SAME",
        dimension_numbers=("NHWC", "HWIO", "NHWC"),
        preferred_element_type=jnp.float32)
    y = jnp.maximum(y + params["conv_b"].reshape(1, 1, 1, -1), 0.0)
    feats = jnp.mean(y, axis=(1, 2))                               # (B, Cf)
    e = jnp.dot(feats.astype(jnp.bfloat16),
                params["embed_w"].astype(jnp.bfloat16),
                preferred_element_type=jnp.float32) + params["embed_b"]
    mean = jnp.mean(e, axis=0, keepdims=True)
    var = jnp.mean((e - mean) ** 2, axis=0, keepdims=True)
    return params["bn_gamma"] * (e - mean) * lax.rsqrt(var + 1e-5) + params["bn_beta"]


if __name__ == "__main__":
    B, C_in, H, W = 2, 4, 16, 16
    C_feat, embed_size = 32, 32   # scaled-down stand-ins for 2048 / embed_size

    key = jax.random.PRNGKey(0)
    k_img, k_params = jax.random.split(key)
    images = jax.random.normal(k_img, (B, C_in, H, W), jnp.float32)
    params = init_params(k_params, C_in, C_feat, embed_size)
    prepared = prepare_params(params)   # pads/casts run once, outside the forward

    fwd = jax.jit(lambda imgs: encoder_cnn_forward(prepared, imgs))
    out = jax.block_until_ready(fwd(images))
    assert out.shape == (B, embed_size) and out.dtype == jnp.float32
    assert bool(jnp.all(jnp.isfinite(out)))

    ref = jax.block_until_ready(_reference_forward(params, images))
    assert jnp.allclose(out, ref, atol=5e-2, rtol=5e-2), float(
        jnp.max(jnp.abs(out - ref)))
    print("KERNEL_OK")
</pallas_src>

<mosaic_0001>
module attributes {stable_mosaic.version = 11 : i64} {
  func.func @conv_gap_kernel(%arg0: i32, %arg1: memref<1x18x18x4xbf16, #tpu.memory_space<vmem>>, %arg2: memref<3x3x4x128xbf16, #tpu.memory_space<vmem>>, %arg3: memref<1x128xf32, #tpu.memory_space<vmem>>, %arg4: memref<1x8x128xf32, #tpu.memory_space<vmem>>) attributes {dimension_semantics = [#tpu.dimension_semantics<parallel>], iteration_bounds = array<i64: 2>, scalar_prefetch = 0 : i64, scratch_operands = 0 : i64, tpu.core_type = #tpu.core_type<tc>, window_params = [{transform_indices = @transform_0, window_bounds = array<i64: 1, 18, 18, 4>}, {pipeline_mode = #tpu.pipeline_mode<synchronous>, transform_indices = @transform_1, window_bounds = array<i64: 3, 3, 4, 128>}, {pipeline_mode = #tpu.pipeline_mode<synchronous>, transform_indices = @transform_2, window_bounds = array<i64: 1, 128>}, {transform_indices = @transform_3, window_bounds = array<i64: 1, 8, 128>}]} {
    %c0 = arith.constant 0 : index
    %c0_0 = arith.constant 0 : index
    %c0_1 = arith.constant 0 : index
    %c0_2 = arith.constant 0 : index
    %0 = vector.load %arg1[%c0, %c0_0, %c0_1, %c0_2] : memref<1x18x18x4xbf16, #tpu.memory_space<vmem>>, vector<1x18x18x4xbf16>
    %1 = vector.shape_cast %0 : vector<1x18x18x4xbf16> to vector<18x18x4xbf16>
    %c0_3 = arith.constant 0 : index
    %c0_4 = arith.constant 0 : index
    %c0_5 = arith.constant 0 : index
    %c0_6 = arith.constant 0 : index
    %2 = vector.load %arg2[%c0_3, %c0_4, %c0_5, %c0_6] : memref<3x3x4x128xbf16, #tpu.memory_space<vmem>>, vector<3x3x4x128xbf16>
    %cst = arith.constant 0.000000e+00 : f32
    %3 = vector.broadcast %cst : f32 to vector<256x128xf32>
    %4 = vector.extract_strided_slice %1 {offsets = [0, 0, 0], sizes = [16, 16, 4], strides = [1, 1, 1]} : vector<18x18x4xbf16> to vector<16x16x4xbf16>
    %5 = vector.shape_cast %4 : vector<16x16x4xbf16> to vector<256x4xbf16>
    %6 = vector.extract_strided_slice %2 {offsets = [0, 0, 0, 0], sizes = [1, 1, 4, 128], strides = [1, 1, 1, 1]} : vector<3x3x4x128xbf16> to vector<1x1x4x128xbf16>
    %7 = vector.shape_cast %6 : vector<1x1x4x128xbf16> to vector<4x128xbf16>
    %cst_7 = arith.constant dense<0.000000e+00> : vector<256x128xf32>
    %8 = tpu.matmul %5, %7, %cst_7 {dimension_numbers = #tpu.dot_dimension_numbers<[1], [0], [0], [1], [0, 0, 1, 1], [], []>} : vector<256x4xbf16>, vector<4x128xbf16>, vector<256x128xf32> -> vector<256x128xf32>
    %9 = arith.addf %3, %8 : vector<256x128xf32>
    %10 = vector.extract_strided_slice %1 {offsets = [0, 1, 0], sizes = [16, 16, 4], strides = [1, 1, 1]} : vector<18x18x4xbf16> to vector<16x16x4xbf16>
    %11 = vector.shape_cast %10 : vector<16x16x4xbf16> to vector<256x4xbf16>
    %12 = vector.extract_strided_slice %2 {offsets = [0, 1, 0, 0], sizes = [1, 1, 4, 128], strides = [1, 1, 1, 1]} : vector<3x3x4x128xbf16> to vector<1x1x4x128xbf16>
    %13 = vector.shape_cast %12 : vector<1x1x4x128xbf16> to vector<4x128xbf16>
    %cst_8 = arith.constant dense<0.000000e+00> : vector<256x128xf32>
    %14 = tpu.matmul %11, %13, %cst_8 {dimension_numbers = #tpu.dot_dimension_numbers<[1], [0], [0], [1], [0, 0, 1, 1], [], []>} : vector<256x4xbf16>, vector<4x128xbf16>, vector<256x128xf32> -> vector<256x128xf32>
    %15 = arith.addf %9, %14 : vector<256x128xf32>
    %16 = vector.extract_strided_slice %1 {offsets = [0, 2, 0], sizes = [16, 16, 4], strides = [1, 1, 1]} : vector<18x18x4xbf16> to vector<16x16x4xbf16>
    %17 = vector.shape_cast %16 : vector<16x16x4xbf16> to vector<256x4xbf16>
    %18 = vector.extract_strided_slice %2 {offsets = [0, 2, 0, 0], sizes = [1, 1, 4, 128], strides = [1, 1, 1, 1]} : vector<3x3x4x128xbf16> to vector<1x1x4x128xbf16>
    %19 = vector.shape_cast %18 : vector<1x1x4x128xbf16> to vector<4x128xbf16>
    %cst_9 = arith.constant dense<0.000000e+00> : vector<256x128xf32>
    %20 = tpu.matmul %17, %19, %cst_9 {dimension_numbers = #tpu.dot_dimension_numbers<[1], [0], [0], [1], [0, 0, 1, 1], [], []>} : vector<256x4xbf16>, vector<4x128xbf16>, vector<256x128xf32> -> vector<256x128xf32>
    %21 = arith.addf %15, %20 : vector<256x128xf32>
    %22 = vector.extract_strided_slice %1 {offsets = [1, 0, 0], sizes = [16, 16, 4], strides = [1, 1, 1]} : vector<18x18x4xbf16> to vector<16x16x4xbf16>
    %23 = vector.shape_cast %22 : vector<16x16x4xbf16> to vector<256x4xbf16>
    %24 = vector.extract_strided_slice %2 {offsets = [1, 0, 0, 0], sizes = [1, 1, 4, 128], strides = [1, 1, 1, 1]} : vector<3x3x4x128xbf16> to vector<1x1x4x128xbf16>
    %25 = vector.shape_cast %24 : vector<1x1x4x128xbf16> to vector<4x128xbf16>
    %cst_10 = arith.constant dense<0.000000e+00> : vector<256x128xf32>
    %26 = tpu.matmul %23, %25, %cst_10 {dimension_numbers = #tpu.dot_dimension_numbers<[1], [0], [0], [1], [0, 0, 1, 1], [], []>} : vector<256x4xbf16>, vector<4x128xbf16>, vector<256x128xf32> -> vector<256x128xf32>
    %27 = arith.addf %21, %26 : vector<256x128xf32>
    %28 = vector.extract_strided_slice %1 {offsets = [1, 1, 0], sizes = [16, 16, 4], strides = [1, 1, 1]} : vector<18x18x4xbf16> to vector<16x16x4xbf16>
    %29 = vector.shape_cast %28 : vector<16x16x4xbf16> to vector<256x4xbf16>
    %30 = vector.extract_strided_slice %2 {offsets = [1, 1, 0, 0], sizes = [1, 1, 4, 128], strides = [1, 1, 1, 1]} : vector<3x3x4x128xbf16> to vector<1x1x4x128xbf16>
    %31 = vector.shape_cast %30 : vector<1x1x4x128xbf16> to vector<4x128xbf16>
    %cst_11 = arith.constant dense<0.000000e+00> : vector<256x128xf32>
    %32 = tpu.matmul %29, %31, %cst_11 {dimension_numbers = #tpu.dot_dimension_numbers<[1], [0], [0], [1], [0, 0, 1, 1], [], []>} : vector<256x4xbf16>, vector<4x128xbf16>, vector<256x128xf32> -> vector<256x128xf32>
    %33 = arith.addf %27, %32 : vector<256x128xf32>
    %34 = vector.extract_strided_slice %1 {offsets = [1, 2, 0], sizes = [16, 16, 4], strides = [1, 1, 1]} : vector<18x18x4xbf16> to vector<16x16x4xbf16>
    %35 = vector.shape_cast %34 : vector<16x16x4xbf16> to vector<256x4xbf16>
    %36 = vector.extract_strided_slice %2 {offsets = [1, 2, 0, 0], sizes = [1, 1, 4, 128], strides = [1, 1, 1, 1]} : vector<3x3x4x128xbf16> to vector<1x1x4x128xbf16>
    %37 = vector.shape_cast %36 : vector<1x1x4x128xbf16> to vector<4x128xbf16>
    %cst_12 = arith.constant dense<0.000000e+00> : vector<256x128xf32>
    %38 = tpu.matmul %35, %37, %cst_12 {dimension_numbers = #tpu.dot_dimension_numbers<[1], [0], [0], [1], [0, 0, 1, 1], [], []>} : vector<256x4xbf16>, vector<4x128xbf16>, vector<256x128xf32> -> vector<256x128xf32>
    %39 = arith.addf %33, %38 : vector<256x128xf32>
    %40 = vector.extract_strided_slice %1 {offsets = [2, 0, 0], sizes = [16, 16, 4], strides = [1, 1, 1]} : vector<18x18x4xbf16> to vector<16x16x4xbf16>
    %41 = vector.shape_cast %40 : vector<16x16x4xbf16> to vector<256x4xbf16>
    %42 = vector.extract_strided_slice %2 {offsets = [2, 0, 0, 0], sizes = [1, 1, 4, 128], strides = [1, 1, 1, 1]} : vector<3x3x4x128xbf16> to vector<1x1x4x128xbf16>
    %43 = vector.shape_cast %42 : vector<1x1x4x128xbf16> to vector<4x128xbf16>
    %cst_13 = arith.constant dense<0.000000e+00> : vector<256x128xf32>
    %44 = tpu.matmul %41, %43, %cst_13 {dimension_numbers = #tpu.dot_dimension_numbers<[1], [0], [0], [1], [0, 0, 1, 1], [], []>} : vector<256x4xbf16>, vector<4x128xbf16>, vector<256x128xf32> -> vector<256x128xf32>
    %45 = arith.addf %39, %44 : vector<256x128xf32>
    %46 = vector.extract_strided_slice %1 {offsets = [2, 1, 0], sizes = [16, 16, 4], strides = [1, 1, 1]} : vector<18x18x4xbf16> to vector<16x16x4xbf16>
    %47 = vector.shape_cast %46 : vector<16x16x4xbf16> to vector<256x4xbf16>
    %48 = vector.extract_strided_slice %2 {offsets = [2, 1, 0, 0], sizes = [1, 1, 4, 128], strides = [1, 1, 1, 1]} : vector<3x3x4x128xbf16> to vector<1x1x4x128xbf16>
    %49 = vector.shape_cast %48 : vector<1x1x4x128xbf16> to vector<4x128xbf16>
    %cst_14 = arith.constant dense<0.000000e+00> : vector<256x128xf32>
    %50 = tpu.matmul %47, %49, %cst_14 {dimension_numbers = #tpu.dot_dimension_numbers<[1], [0], [0], [1], [0, 0, 1, 1], [], []>} : vector<256x4xbf16>, vector<4x128xbf16>, vector<256x128xf32> -> vector<256x128xf32>
    %51 = arith.addf %45, %50 : vector<256x128xf32>
    %52 = vector.extract_strided_slice %1 {offsets = [2, 2, 0], sizes = [16, 16, 4], strides = [1, 1, 1]} : vector<18x18x4xbf16> to vector<16x16x4xbf16>
    %53 = vector.shape_cast %52 : vector<16x16x4xbf16> to vector<256x4xbf16>
    %54 = vector.extract_strided_slice %2 {offsets = [2, 2, 0, 0], sizes = [1, 1, 4, 128], strides = [1, 1, 1, 1]} : vector<3x3x4x128xbf16> to vector<1x1x4x128xbf16>
    %55 = vector.shape_cast %54 : vector<1x1x4x128xbf16> to vector<4x128xbf16>
    %cst_15 = arith.constant dense<0.000000e+00> : vector<256x128xf32>
    %56 = tpu.matmul %53, %55, %cst_15 {dimension_numbers = #tpu.dot_dimension_numbers<[1], [0], [0], [1], [0, 0, 1, 1], [], []>} : vector<256x4xbf16>, vector<4x128xbf16>, vector<256x128xf32> -> vector<256x128xf32>
    %57 = arith.addf %51, %56 : vector<256x128xf32>
    %c0_16 = arith.constant 0 : index
    %c0_17 = arith.constant 0 : index
    %58 = vector.load %arg3[%c0_16, %c0_17] : memref<1x128xf32, #tpu.memory_space<vmem>>, vector<1x128xf32>
    %59 = vector.broadcast %58 : vector<1x128xf32> to vector<256x128xf32>
    %60 = arith.addf %57, %59 : vector<256x128xf32>
    %cst_18 = arith.constant 0.000000e+00 : f32
    %61 = vector.broadcast %cst_18 : f32 to vector<256x128xf32>
    %62 = arith.maximumf %60, %61 : vector<256x128xf32>
    %63 = vector.shape_cast %62 : vector<256x128xf32> to vector<32x8x128xf32>
    %cst_19 = arith.constant dense<0.000000e+00> : vector<8x128xf32>
    %64 = vector.multi_reduction <add>, %63, %cst_19 [0] : vector<32x8x128xf32> to vector<8x128xf32>
    %c0_20 = arith.constant 0 : index
    %c0_21 = arith.constant 0 : index
    %c0_22 = arith.constant 0 : index
    %65 = vector.load %arg4[%c0_20, %c0_21, %c0_22] : memref<1x8x128xf32, #tpu.memory_space<vmem>>, vector<1x8x128xf32>
    %66 = vector.shape_cast %65 : vector<1x8x128xf32> to vector<8x128xf32>
    %67 = vector.shape_cast %64 : vector<8x128xf32> to vector<1x8x128xf32>
    tpu.vector_store %arg4[%c0_20, %c0_21, %c0_22], %67 {strides = array<i32>} : memref<1x8x128xf32, #tpu.memory_space<vmem>>, vector<1x8x128xf32>,
    return
  }
  func.func @transform_0(%arg0: i32) -> (i32, i32, i32, i32) {
    %c0_i32 = arith.constant 0 : i32
    %c0_i32_0 = arith.constant 0 : i32
    %c0_i32_1 = arith.constant 0 : i32
    %c0_i32_2 = arith.constant 0 : i32
    return %arg0, %c0_i32, %c0_i32_0, %c0_i32_1 : i32, i32, i32, i32
  }
  func.func @transform_1(%arg0: i32) -> (i32, i32, i32, i32) {
    %c0_i32 = arith.constant 0 : i32
    %c0_i32_0 = arith.constant 0 : i32
    %c0_i32_1 = arith.constant 0 : i32
    %c0_i32_2 = arith.constant 0 : i32
    %c0_i32_3 = arith.constant 0 : i32
    return %c0_i32, %c0_i32_0, %c0_i32_1, %c0_i32_2 : i32, i32, i32, i32
  }
  func.func @transform_2(%arg0: i32) -> (i32, i32) {
    %c0_i32 = arith.constant 0 : i32
    %c0_i32_0 = arith.constant 0 : i32
    %c0_i32_1 = arith.constant 0 : i32
    return %c0_i32, %c0_i32_0 : i32, i32
  }
  func.func @transform_3(%arg0: i32) -> (i32, i32, i32) {
    %c0_i32 = arith.constant 0 : i32
    %c0_i32_0 = arith.constant 0 : i32
    %c0_i32_1 = arith.constant 0 : i32
    return %arg0, %c0_i32, %c0_i32_0 : i32, i32, i32
  }
}

module attributes {stable_mosaic.version = 11 : i64} {
  func.func @embed_bn_kernel(%arg0: memref<2x8x128xf32, #tpu.memory_space<vmem>>, %arg1: memref<128x128xbf16, #tpu.memory_space<vmem>>, %arg2: memref<1x128xf32, #tpu.memory_space<vmem>>, %arg3: memref<1x128xf32, #tpu.memory_space<vmem>>, %arg4: memref<1x128xf32, #tpu.memory_space<vmem>>, %arg5: memref<2x128xf32, #tpu.memory_space<vmem>>) attributes {dimension_semantics = [], scalar_prefetch = 0 : i64, scratch_operands = 0 : i64, tpu.core_type = #tpu.core_type<tc>} {
    %c0 = arith.constant 0 : index
    %c0_0 = arith.constant 0 : index
    %c0_1 = arith.constant 0 : index
    %0 = vector.load %arg0[%c0, %c0_0, %c0_1] : memref<2x8x128xf32, #tpu.memory_space<vmem>>, vector<2x8x128xf32>
    %cst = arith.constant dense<0.000000e+00> : vector<2x128xf32>
    %1 = vector.multi_reduction <add>, %0, %cst [1] : vector<2x8x128xf32> to vector<2x128xf32>
    %cst_2 = arith.constant 3.906250e-03 : f32
    %2 = vector.broadcast %cst_2 : f32 to vector<2x128xf32>
    %3 = arith.mulf %1, %2 : vector<2x128xf32>
    %4 = arith.truncf %3 : vector<2x128xf32> to vector<2x128xbf16>
    %c0_3 = arith.constant 0 : index
    %c0_4 = arith.constant 0 : index
    %5 = vector.load %arg1[%c0_3, %c0_4] : memref<128x128xbf16, #tpu.memory_space<vmem>>, vector<128x128xbf16>
    %cst_5 = arith.constant dense<0.000000e+00> : vector<2x128xf32>
    %6 = tpu.matmul %4, %5, %cst_5 {dimension_numbers = #tpu.dot_dimension_numbers<[1], [0], [0], [1], [0, 0, 1, 1], [], []>} : vector<2x128xbf16>, vector<128x128xbf16>, vector<2x128xf32> -> vector<2x128xf32>
    %c0_6 = arith.constant 0 : index
    %c0_7 = arith.constant 0 : index
    %7 = vector.load %arg2[%c0_6, %c0_7] : memref<1x128xf32, #tpu.memory_space<vmem>>, vector<1x128xf32>
    %8 = vector.broadcast %7 : vector<1x128xf32> to vector<2x128xf32>
    %9 = arith.addf %6, %8 : vector<2x128xf32>
    %cst_8 = arith.constant dense<0.000000e+00> : vector<128xf32>
    %10 = vector.multi_reduction <add>, %9, %cst_8 [0] : vector<2x128xf32> to vector<128xf32>
    %11 = vector.shape_cast %10 : vector<128xf32> to vector<1x128xf32>
    %cst_9 = arith.constant 2.000000e+00 : f32
    %12 = vector.broadcast %cst_9 : f32 to vector<1x128xf32>
    %13 = arith.divf %11, %12 : vector<1x128xf32>
    %14 = vector.broadcast %13 : vector<1x128xf32> to vector<2x128xf32>
    %15 = arith.subf %9, %14 : vector<2x128xf32>
    %16 = vector.broadcast %13 : vector<1x128xf32> to vector<2x128xf32>
    %17 = arith.subf %9, %16 : vector<2x128xf32>
    %18 = arith.mulf %15, %17 : vector<2x128xf32>
    %cst_10 = arith.constant dense<0.000000e+00> : vector<128xf32>
    %19 = vector.multi_reduction <add>, %18, %cst_10 [0] : vector<2x128xf32> to vector<128xf32>
    %20 = vector.shape_cast %19 : vector<128xf32> to vector<1x128xf32>
    %cst_11 = arith.constant 2.000000e+00 : f32
    %21 = vector.broadcast %cst_11 : f32 to vector<1x128xf32>
    %22 = arith.divf %20, %21 : vector<1x128xf32>
    %c0_12 = arith.constant 0 : index
    %c0_13 = arith.constant 0 : index
    %23 = vector.load %arg3[%c0_12, %c0_13] : memref<1x128xf32, #tpu.memory_space<vmem>>, vector<1x128xf32>
    %24 = vector.broadcast %13 : vector<1x128xf32> to vector<2x128xf32>
    %25 = arith.subf %9, %24 : vector<2x128xf32>
    %26 = vector.broadcast %23 : vector<1x128xf32> to vector<2x128xf32>
    %27 = arith.mulf %26, %25 : vector<2x128xf32>
    %cst_14 = arith.constant 9.99999974E-6 : f32
    %28 = vector.broadcast %cst_14 : f32 to vector<1x128xf32>
    %29 = arith.addf %22, %28 : vector<1x128xf32>
    %30 = math.rsqrt %29 : vector<1x128xf32>
    %31 = vector.broadcast %30 : vector<1x128xf32> to vector<2x128xf32>
    %32 = arith.mulf %27, %31 : vector<2x128xf32>
    %c0_15 = arith.constant 0 : index
    %c0_16 = arith.constant 0 : index
    %33 = vector.load %arg4[%c0_15, %c0_16] : memref<1x128xf32, #tpu.memory_space<vmem>>, vector<1x128xf32>
    %34 = vector.broadcast %33 : vector<1x128xf32> to vector<2x128xf32>
    %35 = arith.addf %32, %34 : vector<2x128xf32>
    %c0_17 = arith.constant 0 : index
    %c0_18 = arith.constant 0 : index
    %36 = vector.load %arg5[%c0_17, %c0_18] : memref<2x128xf32, #tpu.memory_space<vmem>>, vector<2x128xf32>
    tpu.vector_store %arg5[%c0_17, %c0_18], %35 {strides = array<i32>} : memref<2x128xf32, #tpu.memory_space<vmem>>, vector<2x128xf32>,
    return
  }
}

</mosaic_0001>

<bundles_post_ra>
// kernel: _lambda_.3
= control target key start
LH: loop header
LB: loop body
LE: loop exit
PB: predicated region body
PF: predicated region fallthrough
CT: control target
= control target key end

     0   :  { %s344_s0 = inlined_call_operand.vmem [shape: f32[2,8,128], index: 0, kind: input, shape index: {}]   ;;  %s345_s1 = inlined_call_operand.vmem [shape: bf16[128,128], index: 1, kind: input, shape index: {}]   ;;  %s346_s2 = inlined_call_operand.vmem [shape: f32[1,128], index: 2, kind: input, shape index: {}]   ;;  %s347_s3 = inlined_call_operand.vmem [shape: f32[1,128], index: 3, kind: input, shape index: {}]   ;;  %s348_s4 = inlined_call_operand.vmem [shape: f32[1,128], index: 4, kind: input, shape index: {}]   ;;  %s349_s5 = inlined_call_operand.hbm [shape: f32[2,128], index: 5, kind: output, shape index: {}]  }
   0x1   :  { %v232_v0 = vld [vmem:[%s345_s1 + $0x38] sm:$0xff]  ;;  %v231_v1 = vld [vmem:[%s345_s1 + $0x30] sm:$0xff]  ;;  %v21_v2 = vld [vmem:[%s344_s0] sm:$0xff] }
   0x2   :  { %115 = vmatpush.bf16.msra.mxu0 %v232_v0  ;;  %v22_v3 = vld [vmem:[%s344_s0 + $0x8] sm:$0xff]  ;;  %v23_v4 = vrot.slane %v21_v2, 4 }
   0x3   :  { %v29_v5 = vrot.slane %v22_v3, 4 }
   0x4   :  { %10 = vsyncpa [#allocation3], 0  ;;  %v24_v6 = vadd.f32 %v23_v4, %v21_v2  ;;  %v230_v7 = vld [vmem:[%s345_s1 + $0x28] sm:$0xff]  ;;  %v229_v12 = vld [vmem:[%s345_s1 + $0x20] sm:$0xff]  ;;  %vm63_vm0 = vcmask 1041409   ;;  %v268_v30 = vmov 2.0  }
   0x5   :  { %v30_v8 = vadd.f32 %v29_v5, %v22_v3  ;;  %v228_v17 = vld [vmem:[%s345_s1 + $0x18] sm:$0xff]  ;;  %v227_v21 = vld [vmem:[%s345_s1 + $0x10] sm:$0xff]  ;;  %v226_v24 = vld [vmem:[%s345_s1 + $0x8] sm:$0xff]  ;;  %238 = vrcp.f32 %v268_v30  ;;  %vm128_vm1 = vcmask 1041408   ;;  %s269_s16 = smov [#allocation2]   ;;  %s184_s20 = sshll.u32 %s349_s5, 4  ;;  %s185_s20 = int_to_ptr.hbm [resolvable:$true] %s184_s20 }
   0x6   :  { %116 = vmatpush.bf16.msra.mxu0 %v231_v1  ;;  %v25_v9 = vrot.slane %v24_v6, 2  ;;  %v225_v27 = vld [vmem:[%s345_s1] sm:$0xff]  ;;  %s182_s17 = sshll.u32 %s269_s16, 4  ;;  %s183_s17 = int_to_ptr.vmem [resolvable:$true] %s182_s17 }
   0x7   :  { %v31_v10 = vrot.slane %v30_v8, 2  ;;  %v235_v32 = vld [vmem:[%s346_s2] ss:$0 sm:$0xff] }
   0x8   :  { %v26_v11 = vadd.f32 %v25_v9, %v24_v6  ;;  %v236_v0 = vld [vmem:[%s347_s3] ss:$0 sm:$0xff] }
   0x9   :  { %v32_v13 = vadd.f32 %v31_v10, %v30_v8  ;;  %v237_v4 = vld [vmem:[%s348_s4] ss:$0 sm:$0xff] }
   0xa   :  { %117 = vmatpush.bf16.msra.mxu0 %v230_v7  ;;  %v27_v14 = vrot.slane %v26_v11, 1 }
   0xb   :  { %v33_v15 = vrot.slane %v32_v13, 1  ;;  %v239_v31 = vpop.eup %238 }
   0xc   :  { %v28_v16 = vadd.f32 %v27_v14, %v26_v11  ;;  %v137_v33 = vmul.f32 2.0, %v239_v31  ;;  %vm141_vm2 = vweird.f32 %v239_v31 }
   0xd   :  { %v34_v18 = vadd.f32 %v33_v15, %v32_v13 }
   0xe   :  { %118 = vmatpush.bf16.msra.mxu0 %v229_v12  ;;  %v35_v19 = vmul.f32 0.00390625, %v28_v16  ;;  %v138_v36 = vsub.f32 1.0, %v137_v33 }
   0xf   :  { %v36_v20 = vmul.f32 0.00390625, %v34_v18 }
  0x10   :  { %v37_v22 = vpack.c.bf16 %v35_v19, %v35_v19  ;;  %v139_v39 = vmul.f32 %v239_v31, %v138_v36 }
  0x11   :  { %v38_v23 = vpack.c.bf16 %v36_v20, %v36_v20 }
  0x12   :  { %119 = vmatpush.bf16.msra.mxu0 %v228_v17  ;;  %v61_v25 = vunpack.c.l.b16 %v37_v22  ;;  %v140_v43 = vadd.f32 %v239_v31, %v139_v39 }
  0x13   :  { %v62_v26 = vunpack.c.l.b16 %v38_v23 }
  0x14   :  { %v142_v46 = vsel %vm141_vm2, %v239_v31, %v140_v43 }
  0x15   :  { %v64_v28 = vsel %vm63_vm0, %v62_v26, %v61_v25 }
  0x16   :  { %120 = vmatpush.bf16.msra.mxu0 %v227_v21  ;;  %v65_v29 = vpack.c.b16 %v64_v28, %v64_v28 }
  0x1a   :  { %121 = vmatpush.bf16.msra.mxu0 %v226_v24 }
  0x1e   :  { %122 = vmatpush.bf16.msra.mxu0 %v225_v27 }
  0x21   :  { %123 = vmatmul.bf16.vlgmr.msra.gmra.mxu0 %v65_v29 }
  0x9e   :  { %v124_v34 = vpop.f32.mrf.mxu0 }
  0x9f   :  { %v125_v35 = vadd.f32 %v235_v32, %v124_v34 }
  0xa1   :  { %v129_v37 = vsel %vm128_vm1, %v125_v35, 0.0 }
  0xa2   :  { %v130_v38 = vrot.slane %v129_v37, 4 }
  0xa4   :  { %v131_v40 = vadd.f32 %v130_v38, %v129_v37 }
  0xa6   :  { %v132_v41 = vrot.slane %v131_v40, 2  ;;  %v126_v42 = vpop.f32.mrf.mxu0 }
  0xa8   :  { %v133_v44 = vadd.f32 %v132_v41, %v131_v40 }
  0xaa   :  { %v134_v45 = vrot.slane %v133_v44, 1 }
  0xac   :  { %v135_v47 = vadd.f32 %v134_v45, %v133_v44 }
  0xae   :  { %v143_v48 = vmul.f32 %v142_v46, %v135_v47 }
  0xb0   :  { %v144_v49 = vsub.f32 %v125_v35, %v143_v48 }
  0xb2   :  { %v145_v50 = vmul.f32 %v144_v49, %v144_v49  ;;  %v158_v3 = vmul.f32 %v236_v0, %v144_v49 }
  0xb4   :  { %v146_v51 = vsel %vm128_vm1, %v145_v50, 0.0 }
  0xb5   :  { %v147_v52 = vrot.slane %v146_v51, 4 }
  0xb7   :  { %v148_v53 = vadd.f32 %v147_v52, %v146_v51 }
  0xb9   :  { %v149_v54 = vrot.slane %v148_v53, 2 }
  0xbb   :  { %v150_v55 = vadd.f32 %v149_v54, %v148_v53 }
  0xbd   :  { %v151_v56 = vrot.slane %v150_v55, 1 }
  0xbf   :  { %v152_v57 = vadd.f32 %v151_v56, %v150_v55 }
  0xc1   :  { %v153_v58 = vmul.f32 %v152_v57, %v142_v46 }
  0xc3   :  { %v159_v59 = vadd.f32 1e-05, %v153_v58 }
  0xc5   :  { %240 = vrsqrt.f32 %v159_v59  ;;  %vm166_vm4 = vweird.f32 %v159_v59 }
  0xcb   :  { %v241_v60 = vpop.eup %240 }
  0xcc   :  { %v161_v61 = vmul.f32 %v241_v60, %v159_v59  ;;  %vm167_vm3 = vweird.f32 %v241_v60 }
  0xcd   :  { %vm168_vm5 = vmor %vm166_vm4, %vm167_vm3 }
  0xce   :  { %v162_v62 = vmul.f32 %v241_v60, %v161_v61 }
  0xd0   :  { %v163_v63 = vmul.f32 0.5, %v162_v62 }
  0xd2   :  { %v164_v1 = vsub.f32 1.5, %v163_v63 }
  0xd4   :  { %v165_v2 = vmul.f32 %v241_v60, %v164_v1 }
  0xd6   :  { %v169_v5 = vsel %vm168_vm5, %v241_v60, %v165_v2 }
  0xd7   :  { %v170_v6 = vmul.f32 %v169_v5, %v158_v3 }
  0xd9   :  { %v175_v7 = vadd.f32 %v237_v4, %v170_v6 }
  0xdb   :  { %176 = vst [vmem:[#allocation2] sm:$0x3] %v175_v7 }
  0xdc   :  { %187 = dma.vmem_to_hbm [thread:$0]  %s183_s17, 32, %s185_s20, [#allocation3]  }
  0xdd   :  { %266 = dma.done.wait [#allocation3], 32  }
  0xde   :  { %267 = vsyncadd [#allocation3], 4294967264 }
  0xdf   :  { %192 = vsyncpa [#allocation3], 1 }

// kernel: _lambda_.2
= control target key start
LH: loop header
LB: loop body
LE: loop exit
PB: predicated region body
PF: predicated region fallthrough
CT: control target
= control target key end

     0   :  { %s2692_s12 = smov 0   ;;  %s3795_s0 = inlined_call_operand.vmem [shape: bf16[2,18,18,4], index: 0, kind: input, shape index: {}]   ;;  %s3796_s1 = inlined_call_operand.vmem [shape: bf16[3,3,4,128], index: 1, kind: input, shape index: {}]   ;;  %s3797_s2 = inlined_call_operand.vmem [shape: f32[1,128], index: 2, kind: input, shape index: {}]   ;;  %s3798_s3 = inlined_call_operand.vmem [shape: f32[2,8,128], index: 3, kind: output, shape index: {}]  }
   0x1 LB: > { %s2382_s13 = sadd.s32 4294967295, %s2670_s12   ;;  %p2386_p0 = scmp.ge.s32.totalorder %s2670_s12, 1  ;;  %s2670_s12 = sphi %s2692_s12, %s13_s12  }
   0x2   : > { %p137_p1 = scmp.lt.s32.totalorder %s2670_s12, 3 }
   0x4   : > { %p138_p2 = pnand %p2386_p0, %p137_p1 }
   0x6   : > { %141 = sbr.rel (%p138_p2) target bundleno = 760 (0x2f8), region = 32 }
   0xb   : > { %v225_v0 = vld [vmem:[%s3796_s1 + $0x2] sm:$0x3]  ;;  %vm717_vm0 = vcmask 1041408   ;;  %p160_p3 = scmp.lt.s32.totalorder %s2382_s13, 1  ;;  %v226_v2 = vld [vmem:[%s3796_s1 + $0x4] sm:$0x3] }
   0xc   : > { %v719_v1 = vsel %vm717_vm0, %v225_v0, 0  ;;  %v1258_v3 = vsel %vm717_vm0, %v226_v2, 0  ;;  %v227_v4 = vld [vmem:[%s3796_s1 + $0x6] sm:$0x3]  ;;  %v224_v5 = vld [vmem:[%s3796_s1] sm:$0x3] }
   0xd   : > { %2643 = vmatpush.bf16.msra.mxu1 %v719_v1  ;;  %2644 = vmatpush.bf16.msra.mxu2 %v719_v1  ;;  %s3938_s13 = smov (!%p160_p3, %s2382_s13), 1  ;;  %v228_v6 = vld [vmem:[%s3796_s1 + $0x8] sm:$0x3]  ;;  %v1390_v7 = vsel %vm717_vm0, %v227_v4, 0  ;;  %v939_v8 = vsel %vm717_vm0, %v224_v5, 0  ;;  %vm668_vm4 = vcmask 31744  }
   0xe   : > { %2645 = vmatpush.bf16.msra.mxu3 %v719_v1  ;;  %728 = vmatpush.bf16.msra.mxu0 %v719_v1  ;;  %s2646_s24 = smul.u32 216, %s3938_s13  ;;  %v1544_v9 = vsel %vm717_vm0, %v228_v6, 0  ;;  %vm233_vm1 = vsmask.f32 3328  ;;  %vm234_vm2 = vsmask.f32 7440 }
   0xf   : > { %vm2753_vm3 = vmor %vm233_vm1, %vm234_vm2  ;;  %vm1046_vm5 = vcmask 1042432   ;;  %vm1047_vm6 = vcmask 1046532   ;;  %s2388_s11 = sshll.u32 %s3938_s13, 3 }
  0x10   : > { %s2726_s27 = scalar_lea.vmem %s3795_s0, %s2646_s24  ;;  %vm3056_vm7 = vmor %vm1046_vm5, %vm1047_vm6  ;;  %s168_s16 = scalar_lea.vmem %s3798_s3, %s2388_s11 }
  0x11   : > { %1267 = vmatpush.bf16.msrb.mxu2 %v1258_v3  ;;  %948 = vmatpush.bf16.msrb.mxu1 %v939_v8  ;;  %v2729_v10 = vld [vmem:[%s2726_s27 + $0x30] sm:$0xf]  ;;  %v2732_v11 = vld [vmem:[%s2726_s27 + $0x34] sm:$0xf]  ;;  %v2735_v12 = vld [vmem:[%s2726_s27 + $0x38] sm:$0x1] }
  0x12   : > { %1399 = vmatpush.bf16.msrb.mxu3 %v1390_v7  ;;  %1553 = vmatpush.bf16.msrb.mxu0 %v1544_v9  ;;  %v333_v13 = vshrl.u32 %v2729_v10, 16  ;;  %v336_v14 = vshll.u32 %v2729_v10, 16  ;;  %v342_v15 = vshll.u32 %v2732_v11, 16  ;;  %v346_v16 = vshrl.u32 %v2732_v11, 16  ;;  %v194_v17 = vld [vmem:[%s2726_s27 + $0x60] sm:$0xf] }
  0x13   : > { %v352_v18 = vshll.u32 %v2735_v12, 16  ;;  %v2744_v19 = vld [vmem:[%s2726_s27 + $0x64] sm:$0xf]  ;;  %v196_v20 = vld [vmem:[%s2726_s27 + $0x68] sm:$0x1]  ;;  %v429_v21 = vshrl.u32 %v194_v17, 16 }
  0x14   : > { %v335_v22 = vrot.slane %v333_v13, 4  ;;  %v338_v23 = vrot.slane %v336_v14, 5  ;;  %v344_v24 = vrot.slane %v342_v15, 5  ;;  %v348_v25 = vrot.slane %v346_v16, 4  ;;  %v206_v26 = vld [vmem:[%s2726_s27 + $0x90] sm:$0xf] }
  0x15   : > { %v354_v27 = vrot.slane %v352_v18, 5  ;;  %v431_v28 = vrot.slane %v429_v21, 4  ;;  %v432_v29 = vshll.u32 %v194_v17, 16  ;;  %v438_v30 = vshll.u32 %v2744_v19, 16  ;;  %v207_v35 = vld [vmem:[%s2726_s27 + $0x94] sm:$0xf] }
  0x16   : > { %v339_v31 = vor.u32 %v338_v23, %v335_v22  ;;  %v349_v32 = vor.u32 %v348_v25, %v344_v24  ;;  %v442_v33 = vshrl.u32 %v2744_v19, 16  ;;  %v448_v34 = vshll.u32 %v196_v20, 16  ;;  %v208_v45 = vld [vmem:[%s2726_s27 + $0x98] sm:$0x1]  ;;  %v2763_v61 = vld [vmem:[%s2726_s27] sm:$0xf] }
  0x17   : > { %v434_v37 = vrot.slane %v432_v29, 5  ;;  %v440_v38 = vrot.slane %v438_v30, 5  ;;  %v525_v39 = vshrl.u32 %v206_v26, 16  ;;  %v528_v47 = vshll.u32 %v206_v26, 16  ;;  %v2770_v1 = vld [vmem:[%s2726_s27 + $0x4] sm:$0xf] }
  0x18   : > { %v340_v40 = vrot.slane %v339_v31, 4  ;;  %v350_v41 = vrot.slane %v349_v32, 4  ;;  %v444_v42 = vrot.slane %v442_v33, 4  ;;  %v450_v43 = vrot.slane %v448_v34, 5  ;;  %v2773_v2 = vld [vmem:[%s2726_s27 + $0x8] sm:$0x1] }
  0x19   : > { %v435_v44 = vor.u32 %v434_v37, %v431_v28  ;;  %v527_v46 = vrot.slane %v525_v39, 4  ;;  %v534_v48 = vshll.u32 %v207_v35, 16  ;;  %v538_v52 = vshrl.u32 %v207_v35, 16  ;;  %v2789_v23 = vld [vmem:[%s2726_s27 + $0x3c] sm:$0xf] }
  0x1a   : > { %v345_v49 = vsel %vm2753_vm3, %v340_v40, %v344_v24  ;;  %v355_v50 = vsel %vm2753_vm3, %v350_v41, %v354_v27  ;;  %v445_v51 = vor.u32 %v444_v42, %v440_v38  ;;  %v530_v56 = vrot.slane %v528_v47, 5  ;;  %v2792_v24 = vld [vmem:[%s2726_s27 + $0x40] sm:$0xf]  ;;  %v2797_v29 = vld [vmem:[%s2726_s27 + $0x44] sm:$0x1] }
  0x1b   : > { %v628_v53 = vunpack.c.l.b16 %v345_v49  ;;  %v629_v54 = vunpack.c.l.b16 %v355_v50  ;;  %v436_v55 = vrot.slane %v435_v44, 4  ;;  %v536_v58 = vrot.slane %v534_v48, 5  ;;  %v2812_v47 = vld [vmem:[%s2726_s27 + $0x70] sm:$0xf] }
  0x1c   : > { %v446_v57 = vrot.slane %v445_v51, 4  ;;  %v540_v59 = vrot.slane %v538_v52, 4  ;;  %v544_v60 = vshll.u32 %v208_v45, 16  ;;  %v531_v0 = vor.u32 %v530_v56, %v527_v46  ;;  %v2819_v51 = vld [vmem:[%s2726_s27 + $0x74] sm:$0x1] }
  0x1d   : > { %v2765_v62 = vpack.c.b16 %v629_v54, %v628_v53  ;;  %v441_v63 = vsel %vm2753_vm3, %v436_v55, %v440_v38  ;;  %v237_v9 = vshrl.u32 %v2763_v61, 16  ;;  %v240_v13 = vshll.u32 %v2763_v61, 16  ;;  %v2805_v38 = vld [vmem:[%s2726_s27 + $0x6c] sm:$0xf] }
  0x1e   : > { %v451_v3 = vsel %vm2753_vm3, %v446_v57, %v450_v43  ;;  %v636_v4 = vunpack.c.l.b16 %v441_v63  ;;  %v541_v5 = vor.u32 %v540_v59, %v536_v58  ;;  %v546_v6 = vrot.slane %v544_v60, 5 }
  0x1f   : > { %2393 = vmatmul.msk.bf16.vlgmr.msra.gmra.mxu1 %vm668_vm4, %v2765_v62  ;;  %v637_v7 = vunpack.c.l.b16 %v451_v3  ;;  %v532_v8 = vrot.slane %v531_v0, 4  ;;  %v246_v15 = vshll.u32 %v2770_v1, 16  ;;  %v250_v16 = vshrl.u32 %v2770_v1, 16 }
  0x20   : > { %v542_v14 = vrot.slane %v541_v5, 4  ;;  %v256_v17 = vshll.u32 %v2773_v2, 16  ;;  %v239_v21 = vrot.slane %v237_v9, 4  ;;  %v242_v22 = vrot.slane %v240_v13, 5  ;;  %v209_v5 = vld [vmem:[%s2726_s27 + $0x9c] sm:$0xf] }
  0x21   : > { %v2784_v18 = vpack.c.b16 %v637_v7, %v636_v4  ;;  %v537_v20 = vsel %vm2753_vm3, %v532_v8, %v536_v58  ;;  %v248_v27 = vrot.slane %v246_v15, 5  ;;  %v252_v28 = vrot.slane %v250_v16, 4  ;;  %v210_v9 = vld [vmem:[%s2726_s27 + $0xa0] sm:$0xf] }
  0x22   : > { %v547_v25 = vsel %vm2753_vm3, %v542_v14, %v546_v6  ;;  %v644_v26 = vunpack.c.l.b16 %v537_v20  ;;  %v243_v31 = vor.u32 %v242_v22, %v239_v21  ;;  %v258_v32 = vrot.slane %v256_v17, 5  ;;  %v211_v17 = vld [vmem:[%s2726_s27 + $0xa4] sm:$0x1] }
  0x23   : > { %3841 = vst [vmem:[#allocation2_spill] sm:$0xff] %v2784_v18  ;;  %2397 = vmatmul.msk.bf16.vlgmr.msra.gmra.mxu2 %vm668_vm4, %v2784_v18  ;;  %v645_v30 = vunpack.c.l.b16 %v547_v25  ;;  %v253_v33 = vor.u32 %v252_v28, %v248_v27  ;;  %v357_v34 = vshrl.u32 %v2789_v23, 16  ;;  %v360_v35 = vshll.u32 %v2789_v23, 16 }
  0x24   : > { %v366_v37 = vshll.u32 %v2792_v24, 16  ;;  %v244_v40 = vrot.slane %v243_v31, 4  ;;  %v370_v41 = vshrl.u32 %v2792_v24, 16  ;;  %v376_v42 = vshll.u32 %v2797_v29, 16 }
  0x25   : > { %v2807_v39 = vpack.c.b16 %v645_v30, %v644_v26  ;;  %v254_v43 = vrot.slane %v253_v33, 4  ;;  %v359_v44 = vrot.slane %v357_v34, 4  ;;  %v362_v45 = vrot.slane %v360_v35, 5  ;;  %v2837_v35 = vld [vmem:[%s2726_s27 + $0xc] sm:$0xf] }
  0x26   : > { %v368_v46 = vrot.slane %v366_v37, 5  ;;  %v249_v48 = vsel %vm2753_vm3, %v244_v40, %v248_v27  ;;  %v372_v49 = vrot.slane %v370_v41, 4  ;;  %v378_v50 = vrot.slane %v376_v42, 5 }
  0x27   : > { %3842 = vst [vmem:[#allocation3_spill] sm:$0xff] %v2807_v39  ;;  %2401 = vmatmul.msk.bf16.vlgmr.msra.gmra.mxu3 %vm668_vm4, %v2807_v39  ;;  %v453_v52 = vshrl.u32 %v2805_v38, 16  ;;  %v259_v53 = vsel %vm2753_vm3, %v254_v43, %v258_v32  ;;  %v620_v54 = vunpack.c.l.b16 %v249_v48  ;;  %v363_v55 = vor.u32 %v362_v45, %v359_v44  ;;  %v2844_v43 = vld [vmem:[%s2726_s27 + $0x10] sm:$0xf]  ;;  %v2847_v48 = vld [vmem:[%s2726_s27 + $0x14] sm:$0x1] }
  0x28   : > { %v456_v56 = vshll.u32 %v2805_v38, 16  ;;  %v621_v57 = vunpack.c.l.b16 %v259_v53  ;;  %v373_v58 = vor.u32 %v372_v49, %v368_v46  ;;  %v462_v60 = vshll.u32 %v2812_v47, 16  ;;  %v3024_v39 = vld [vmem:[%s2726_s27 + $0x2c] sm:$0x1] }
  0x29   : > { %v455_v59 = vrot.slane %v453_v52, 4  ;;  %v364_v63 = vrot.slane %v363_v55, 4  ;;  %v466_v3 = vshrl.u32 %v2812_v47, 16  ;;  %v472_v4 = vshll.u32 %v2819_v51, 16 }
  0x2a   : > { %v458_v0 = vrot.slane %v456_v56, 5  ;;  %v652_v6 = vpack.c.b16 %v621_v57, %v620_v54  ;;  %v374_v7 = vrot.slane %v373_v58, 4  ;;  %v464_v8 = vrot.slane %v462_v60, 5  ;;  %v2857_v58 = vld [vmem:[%s2726_s27 + $0x48] sm:$0xf] }
  0x2b   : > { %v369_v13 = vsel %vm2753_vm3, %v364_v63, %v368_v46  ;;  %v468_v15 = vrot.slane %v466_v3, 4  ;;  %v474_v16 = vrot.slane %v472_v4, 5  ;;  %v549_v22 = vshrl.u32 %v209_v5, 16  ;;  %v2862_v3 = vld [vmem:[%s2726_s27 + $0x4c] sm:$0xf] }
  0x2c   : > { %v459_v14 = vor.u32 %v458_v0, %v455_v59  ;;  %2389 = vmatmul.msk.bf16.vlgmr.msra.gmra.mxu0 %vm668_vm4, %v652_v6  ;;  %v379_v20 = vsel %vm2753_vm3, %v374_v7, %v378_v50  ;;  %v630_v21 = vunpack.c.l.b16 %v369_v13  ;;  %v552_v25 = vshll.u32 %v209_v5, 16 }
  0x2d   : > { %v631_v26 = vunpack.c.l.b16 %v379_v20  ;;  %v469_v28 = vor.u32 %v468_v15, %v464_v8  ;;  %v558_v30 = vshll.u32 %v210_v9, 16  ;;  %v551_v31 = vrot.slane %v549_v22, 4  ;;  %v2869_v15 = vld [vmem:[%s2726_s27 + $0x50] sm:$0x1] }
  0x2e   : > { %v460_v27 = vrot.slane %v459_v14, 4  ;;  %v554_v32 = vrot.slane %v552_v25, 5  ;;  %v562_v33 = vshrl.u32 %v210_v9, 16  ;;  %v568_v34 = vshll.u32 %v211_v17, 16 }
  0x2f   : > { %v2839_v37 = vpack.c.b16 %v631_v26, %v630_v21  ;;  %v470_v41 = vrot.slane %v469_v28, 4  ;;  %v560_v42 = vrot.slane %v558_v30, 5  ;;  %v261_v52 = vshrl.u32 %v2837_v35, 16  ;;  %v2880_v28 = vld [vmem:[%s2726_s27 + $0x78] sm:$0xf] }
  0x30   : > { %v465_v40 = vsel %vm2753_vm3, %v460_v27, %v464_v8  ;;  %v555_v45 = vor.u32 %v554_v32, %v551_v31  ;;  %v564_v46 = vrot.slane %v562_v33, 4  ;;  %v570_v50 = vrot.slane %v568_v34, 5  ;;  %v2884_v34 = vld [vmem:[%s2726_s27 + $0x7c] sm:$0xf] }
  0x31   : > { %v638_v44 = vunpack.c.l.b16 %v465_v40  ;;  %2394 = vmatmul.msk.bf16.gmra.mxu1 %vm668_vm4, %v2839_v37  ;;  %v475_v49 = vsel %vm2753_vm3, %v470_v41, %v474_v16  ;;  %v264_v53 = vshll.u32 %v2837_v35, 16  ;;  %v270_v57 = vshll.u32 %v2844_v43, 16 }
  0x32   : > { %v639_v54 = vunpack.c.l.b16 %v475_v49  ;;  %v556_v55 = vrot.slane %v555_v45, 4  ;;  %v565_v56 = vor.u32 %v564_v46, %v560_v42  ;;  %v263_v59 = vrot.slane %v261_v52, 4 }
  0x33   : > { %v266_v60 = vrot.slane %v264_v53, 5  ;;  %v274_v63 = vshrl.u32 %v2844_v43, 16  ;;  %v280_v0 = vshll.u32 %v2847_v48, 16  ;;  %v272_v7 = vrot.slane %v270_v57, 5 }
  0x34   : > { %v2864_v4 = vpack.c.b16 %v639_v54, %v638_v44  ;;  %v561_v5 = vsel %vm2753_vm3, %v556_v55, %v560_v42  ;;  %v566_v6 = vrot.slane %v565_v56, 4  ;;  %v381_v17 = vshrl.u32 %v2857_v58, 16 }
  0x35   : > { %v646_v8 = vunpack.c.l.b16 %v561_v5  ;;  %v267_v9 = vor.u32 %v266_v60, %v263_v59  ;;  %v276_v13 = vrot.slane %v274_v63, 4  ;;  %v282_v14 = vrot.slane %v280_v0, 5 }
  0x36   : > { %2398 = vmatmul.msk.bf16.gmra.mxu2 %vm668_vm4, %v2864_v4  ;;  %v571_v16 = vsel %vm2753_vm3, %v566_v6, %v570_v50  ;;  %v384_v20 = vshll.u32 %v2857_v58, 16  ;;  %v390_v21 = vshll.u32 %v2862_v3, 16  ;;  %v394_v27 = vshrl.u32 %v2862_v3, 16  ;;  %v2891_v50 = vld [vmem:[%s2726_s27 + $0x80] sm:$0x1] }
  0x37   : > { %v647_v22 = vunpack.c.l.b16 %v571_v16  ;;  %v268_v25 = vrot.slane %v267_v9, 4  ;;  %v277_v26 = vor.u32 %v276_v13, %v272_v7  ;;  %v383_v30 = vrot.slane %v381_v17, 4  ;;  %v2910_v16 = vld [vmem:[%s2726_s27 + $0xac] sm:$0xf]  ;;  %v2913_v17 = vld [vmem:[%s2726_s27 + $0xb0] sm:$0x1] }
  0x38   : > { %v386_v31 = vrot.slane %v384_v20, 5  ;;  %v392_v32 = vrot.slane %v390_v21, 5  ;;  %v400_v33 = vshll.u32 %v2869_v15, 16  ;;  %v396_v44 = vrot.slane %v394_v27, 4  ;;  %3845 = vst [vmem:[#allocation6_spill] sm:$0xff] %v2910_v16 }
  0x39   : > { %v2886_v40 = vpack.c.b16 %v647_v22, %v646_v8  ;;  %v273_v41 = vsel %vm2753_vm3, %v268_v25, %v272_v7  ;;  %v278_v42 = vrot.slane %v277_v26, 4  ;;  %v477_v52 = vshrl.u32 %v2880_v28, 16  ;;  %v2903_v8 = vld [vmem:[%s2726_s27 + $0xa8] sm:$0xf]  ;;  %3846 = vst [vmem:[#allocation7_spill] sm:$0xff] %v2913_v17 }
  0x3a   : > { %v622_v45 = vunpack.c.l.b16 %v273_v41  ;;  %v387_v46 = vor.u32 %v386_v31, %v383_v30  ;;  %v402_v49 = vrot.slane %v400_v33, 5  ;;  %v397_v54 = vor.u32 %v396_v44, %v392_v32  ;;  %3844 = vst [vmem:[#allocation5_spill] sm:$0xff] %v2903_v8 }
  0x3b   : > { %3843 = vst [vmem:[#allocation4_spill] sm:$0xff] %v2886_v40  ;;  %2402 = vmatmul.msk.bf16.gmra.mxu3 %vm668_vm4, %v2886_v40  ;;  %v283_v53 = vsel %vm2753_vm3, %v278_v42, %v282_v14  ;;  %v480_v55 = vshll.u32 %v2880_v28, 16  ;;  %v486_v56 = vshll.u32 %v2884_v34, 16  ;;  %v479_v60 = vrot.slane %v477_v52, 4  ;;  %v2927_v52 = vld [vmem:[%s2726_s27 + $0x18] sm:$0xf] }
  0x3c   : > { %v623_v57 = vunpack.c.l.b16 %v283_v53  ;;  %v388_v59 = vrot.slane %v387_v46, 4  ;;  %v490_v63 = vshrl.u32 %v2884_v34, 16  ;;  %v398_v0 = vrot.slane %v397_v54, 4  ;;  %v3013_v40 = vld [vmem:[%s2726_s27 + $0x24] sm:$0xf] }
  0x3d   : > { %v482_v5 = vrot.slane %v480_v55, 5  ;;  %v488_v6 = vrot.slane %v486_v56, 5  ;;  %v496_v7 = vshll.u32 %v2891_v50, 16  ;;  %v573_v30 = vshrl.u32 %v2903_v8, 16  ;;  %v2932_v56 = vld [vmem:[%s2726_s27 + $0x1c] sm:$0xf] }
  0x3e   : > { %v2905_v9 = vpack.c.b16 %v623_v57, %v622_v45  ;;  %v393_v13 = vsel %vm2753_vm3, %v388_v59, %v392_v32  ;;  %v492_v14 = vrot.slane %v490_v63, 4  ;;  %v403_v20 = vsel %vm2753_vm3, %v398_v0, %v402_v49  ;;  %v2935_v57 = vld [vmem:[%s2726_s27 + $0x20] sm:$0x1] }
  0x3f   : > { %v632_v21 = vunpack.c.l.b16 %v393_v13  ;;  %v483_v22 = vor.u32 %v482_v5, %v479_v60  ;;  %v498_v25 = vrot.slane %v496_v7, 5  ;;  %v633_v26 = vunpack.c.l.b16 %v403_v20 }
  0x40   : > { %2390 = vmatmul.msk.bf16.gmra.mxu0 %vm668_vm4, %v2905_v9  ;;  %v493_v27 = vor.u32 %v492_v14, %v488_v6  ;;  %v576_v31 = vshll.u32 %v2903_v8, 16  ;;  %v582_v33 = vshll.u32 %v2910_v16, 16  ;;  %v586_v41 = vshrl.u32 %v2910_v16, 16 }
  0x41   : > { %v484_v32 = vrot.slane %v483_v22, 4  ;;  %v592_v42 = vshll.u32 %v2913_v17, 16  ;;  %v2924_v44 = vpack.c.b16 %v633_v26, %v632_v21  ;;  %v575_v46 = vrot.slane %v573_v30, 4  ;;  %v2947_v26 = vld [vmem:[%s2726_s27 + $0x54] sm:$0xf] }
  0x42   : > { %v494_v45 = vrot.slane %v493_v27, 4  ;;  %v578_v49 = vrot.slane %v576_v31, 5  ;;  %v584_v54 = vrot.slane %v582_v33, 5  ;;  %v588_v55 = vrot.slane %v586_v41, 4  ;;  %v2991_v17 = vld [vmem:[%s2726_s27 + $0xb4] sm:$0xf] }
  0x43   : > { %3847 = vst [vmem:[#allocation8_spill] sm:$0xff] %v2924_v44  ;;  %v489_v53 = vsel %vm2753_vm3, %v484_v32, %v488_v6  ;;  %2395 = vmatmul.msk.bf16.gmra.mxu1 %vm668_vm4, %v2924_v44  ;;  %v594_v0 = vrot.slane %v592_v42, 5  ;;  %v285_v6 = vshrl.u32 %v2927_v52, 16  ;;  %v288_v13 = vshll.u32 %v2927_v52, 16  ;;  %v2952_v32 = vld [vmem:[%s2726_s27 + $0x58] sm:$0xf] }
  0x44   : > { %v499_v59 = vsel %vm2753_vm3, %v494_v45, %v498_v25  ;;  %v640_v60 = vunpack.c.l.b16 %v489_v53  ;;  %v579_v63 = vor.u32 %v578_v49, %v575_v46  ;;  %v589_v7 = vor.u32 %v588_v55, %v584_v54  ;;  %v2957_v46 = vld [vmem:[%s2726_s27 + $0x5c] sm:$0x1]  ;;  %3850 = vst [vmem:[#allocation11_spill] sm:$0xff] %v2991_v17 }
  0x45   : > { %v641_v5 = vunpack.c.l.b16 %v499_v59  ;;  %v294_v20 = vshll.u32 %v2932_v56, 16  ;;  %v298_v21 = vshrl.u32 %v2932_v56, 16  ;;  %v304_v22 = vshll.u32 %v2935_v57, 16 }
  0x46   : > { %v580_v14 = vrot.slane %v579_v63, 4  ;;  %v590_v27 = vrot.slane %v589_v7, 4  ;;  %v287_v30 = vrot.slane %v285_v6, 4  ;;  %v290_v31 = vrot.slane %v288_v13, 5  ;;  %v2967_v7 = vld [vmem:[%s2726_s27 + $0x84] sm:$0xf] }
  0x47   : > { %v2949_v25 = vpack.c.b16 %v641_v5, %v640_v60  ;;  %v296_v41 = vrot.slane %v294_v20, 5  ;;  %v300_v42 = vrot.slane %v298_v21, 4  ;;  %v306_v45 = vrot.slane %v304_v22, 5  ;;  %3848 = vst [vmem:[#allocation9_spill] sm:$0xff] %v2967_v7 }
  0x48   : > { %v585_v33 = vsel %vm2753_vm3, %v580_v14, %v584_v54  ;;  %v595_v49 = vsel %vm2753_vm3, %v590_v27, %v594_v0  ;;  %v291_v55 = vor.u32 %v290_v31, %v287_v30  ;;  %v405_v59 = vshrl.u32 %v2947_v26, 16  ;;  %v2974_v30 = vld [vmem:[%s2726_s27 + $0x88] sm:$0xf] }
  0x49   : > { %2399 = vmatmul.msk.bf16.gmra.mxu2 %vm668_vm4, %v2949_v25  ;;  %v648_v53 = vunpack.c.l.b16 %v585_v33  ;;  %v649_v60 = vunpack.c.l.b16 %v595_v49  ;;  %v301_v63 = vor.u32 %v300_v42, %v296_v41  ;;  %v408_v54 = vshll.u32 %v2947_v26, 16  ;;  %v2979_v49 = vld [vmem:[%s2726_s27 + $0x8c] sm:$0x1] }
  0x4a   : > { %v414_v5 = vshll.u32 %v2952_v32, 16  ;;  %v292_v6 = vrot.slane %v291_v55, 4  ;;  %v407_v13 = vrot.slane %v405_v59, 4  ;;  %v418_v14 = vshrl.u32 %v2952_v32, 16 }
  0x4b   : > { %v424_v0 = vshll.u32 %v2957_v46, 16  ;;  %v2971_v20 = vpack.c.b16 %v649_v60, %v648_v53  ;;  %v302_v21 = vrot.slane %v301_v63, 4  ;;  %v410_v22 = vrot.slane %v408_v54, 5 }
  0x4c   : > { %v416_v27 = vrot.slane %v414_v5, 5  ;;  %v297_v31 = vsel %vm2753_vm3, %v292_v6, %v296_v41  ;;  %v420_v33 = vrot.slane %v418_v14, 4  ;;  %v501_v55 = vshrl.u32 %v2967_v7, 16 }
  0x4d   : > { %3849 = vst [vmem:[#allocation10_spill] sm:$0xff] %v2971_v20  ;;  %v426_v42 = vrot.slane %v424_v0, 5  ;;  %2403 = vmatmul.msk.bf16.gmra.mxu3 %vm668_vm4, %v2971_v20  ;;  %v307_v53 = vsel %vm2753_vm3, %v302_v21, %v306_v45  ;;  %v624_v59 = vunpack.c.l.b16 %v297_v31  ;;  %v411_v60 = vor.u32 %v410_v22, %v407_v13  ;;  %v2996_v22 = vld [vmem:[%s2726_s27 + $0xb8] sm:$0xf] }
  0x4e   : > { %v504_v63 = vshll.u32 %v2967_v7, 16  ;;  %v625_v54 = vunpack.c.l.b16 %v307_v53  ;;  %v421_v41 = vor.u32 %v420_v33, %v416_v27  ;;  %v503_v5 = vrot.slane %v501_v55, 4  ;;  %3851 = vst [vmem:[#allocation12_spill] sm:$0xff] %v2996_v22 }
  0x4f   : > { %v510_v6 = vshll.u32 %v2974_v30, 16  ;;  %v412_v14 = vrot.slane %v411_v60, 4  ;;  %v514_v8 = vshrl.u32 %v2974_v30, 16  ;;  %v520_v20 = vshll.u32 %v2979_v49, 16  ;;  %v3001_v60 = vld [vmem:[%s2726_s27 + $0xbc] sm:$0x1] }
  0x50   : > { %v506_v0 = vrot.slane %v504_v63, 5  ;;  %v2993_v45 = vpack.c.b16 %v625_v54, %v624_v59  ;;  %v422_v21 = vrot.slane %v421_v41, 4  ;;  %3852 = vst [vmem:[#allocation13_spill] sm:$0xff] %v3001_v60  ;;  %v597_v54 = vshrl.u32 %v2991_v17, 16 }
  0x51   : > { %v512_v13 = vrot.slane %v510_v6, 5  ;;  %v417_v31 = vsel %vm2753_vm3, %v412_v14, %v416_v27  ;;  %v516_v55 = vrot.slane %v514_v8, 4  ;;  %v522_v53 = vrot.slane %v520_v20, 5 }
  0x52   : > { %v507_v33 = vor.u32 %v506_v0, %v503_v5  ;;  %2391 = vmatmul.msk.bf16.gmra.mxu0 %vm668_vm4, %v2993_v45  ;;  %v427_v59 = vsel %vm2753_vm3, %v422_v21, %v426_v42  ;;  %v634_v63 = vunpack.c.l.b16 %v417_v31  ;;  %v600_v41 = vshll.u32 %v2991_v17, 16 }
  0x53   : > { %v635_v6 = vunpack.c.l.b16 %v427_v59  ;;  %v517_v5 = vor.u32 %v516_v55, %v512_v13  ;;  %v606_v8 = vshll.u32 %v2996_v22, 16  ;;  %v599_v20 = vrot.slane %v597_v54, 4 }
  0x54   : > { %v508_v27 = vrot.slane %v507_v33, 4  ;;  %v602_v14 = vrot.slane %v600_v41, 5  ;;  %v610_v0 = vshrl.u32 %v2996_v22, 16  ;;  %v616_v16 = vshll.u32 %v3001_v60, 16  ;;  %v3020_v33 = vld [vmem:[%s2726_s27 + $0x28] sm:$0xf] }
  0x55   : > { %v3015_v42 = vpack.c.b16 %v635_v6, %v634_v63  ;;  %v518_v31 = vrot.slane %v517_v5, 4  ;;  %v608_v59 = vrot.slane %v606_v8, 5  ;;  %v1054_v55 = vrot.slane %v2773_v2, 5 }
  0x56   : > { %v513_v21 = vsel %vm2753_vm3, %v508_v27, %v512_v13  ;;  %v603_v54 = vor.u32 %v602_v14, %v599_v20  ;;  %v612_v41 = vrot.slane %v610_v0, 4  ;;  %v618_v6 = vrot.slane %v616_v16, 5 }
  0x57   : > { %3853 = vst [vmem:[#allocation14_spill] sm:$0xff] %v3015_v42  ;;  %v642_v17 = vunpack.c.l.b16 %v513_v21  ;;  %2396 = vmatmul.msk.bf16.gmra.mxu1 %vm668_vm4, %v3015_v42  ;;  %v523_v63 = vsel %vm2753_vm3, %v518_v31, %v522_v53  ;;  %v309_v13 = vshrl.u32 %v3013_v40, 16  ;;  %v312_v27 = vshll.u32 %v3013_v40, 16 }
  0x58   : > { %v643_v5 = vunpack.c.l.b16 %v523_v63  ;;  %v604_v8 = vrot.slane %v603_v54, 4  ;;  %v613_v60 = vor.u32 %v612_v41, %v608_v59  ;;  %v318_v2 = vshll.u32 %v3020_v33, 16  ;;  %v230_v54 = vld [vmem:[%s3796_s1 + $0xc] sm:$0x3]  ;;  %v231_v41 = vld [vmem:[%s3796_s1 + $0xe] sm:$0x3] }
  0x59   : > { %v311_v20 = vrot.slane %v309_v13, 4  ;;  %v314_v14 = vrot.slane %v312_v27, 5  ;;  %v322_v0 = vshrl.u32 %v3020_v33, 16  ;;  %v328_v21 = vshll.u32 %v3024_v39, 16 }
  0x5a   : > { %v3035_v22 = vpack.c.b16 %v643_v5, %v642_v17  ;;  %v609_v16 = vsel %vm2753_vm3, %v604_v8, %v608_v59  ;;  %v614_v53 = vrot.slane %v613_v60, 4  ;;  %v320_v31 = vrot.slane %v318_v2, 5  ;;  %v229_v17 = vld [vmem:[%s3796_s1 + $0xa] sm:$0x3]  ;;  %v232_v60 = vld [vmem:[%s3796_s1 + $0x10] sm:$0x3] }
  0x5b   : > { %v650_v63 = vunpack.c.l.b16 %v609_v16  ;;  %v315_v13 = vor.u32 %v314_v14, %v311_v20  ;;  %v324_v27 = vrot.slane %v322_v0, 4  ;;  %v330_v7 = vrot.slane %v328_v21, 5 }
  0x5c   : > { %3854 = vst [vmem:[#allocation15_spill] sm:$0xff] %v3035_v22  ;;  %2400 = vmatmul.msk.bf16.gmra.mxu2 %vm668_vm4, %v3035_v22  ;;  %v619_v59 = vsel %vm2753_vm3, %v614_v53, %v618_v6  ;;  %v2485_v5 = vrot.slane %v2763_v61, 9  ;;  %v1051_v0 = vrot.slane %v2770_v1, 5  ;;  %v1814_v21 = vsel %vm717_vm0, %v230_v54, 0 }
  0x5d   : > { %v651_v8 = vunpack.c.l.b16 %v619_v59  ;;  %v316_v2 = vrot.slane %v315_v13, 4  ;;  %v325_v20 = vor.u32 %v324_v27, %v320_v31  ;;  %v1968_v16 = vsel %vm717_vm0, %v231_v41, 0  ;;  %1823 = vmatpush.bf16.msra.mxu2 %v1814_v21  ;;  %v2626_v21 = vld [vmem:[%s2726_s27 + $0xc] sm:$0xff] }
  0x5e   : > { %v1682_v22 = vsel %vm717_vm0, %v229_v17, 0  ;;  %v2106_v6 = vsel %vm717_vm0, %v232_v60, 0  ;;  %v1052_v27 = vsel %vm3056_vm7, %v2485_v5, %v1051_v0  ;;  %1977 = vmatpush.bf16.msra.mxu3 %v1968_v16  ;;  %v1053_v54 = vrot.slane %v1051_v0, 4 }
  0x5f   : > { %v3065_v53 = vpack.c.b16 %v651_v8, %v650_v63  ;;  %v321_v61 = vsel %vm2753_vm3, %v316_v2, %v320_v31  ;;  %v326_v13 = vrot.slane %v325_v20, 4  ;;  %1691 = vmatpush.bf16.msra.mxu1 %v1682_v22  ;;  %2115 = vmatpush.bf16.msra.mxu0 %v2106_v6  ;;  %v2486_v41 = vrot.slane %v2837_v35, 9  ;;  %v2625_v22 = vld [vmem:[%s2726_s27] sm:$0xff]  ;;  %v3102_v6 = vld [vmem:[%s2726_s27 + $0x18] sm:$0xff] }
  0x60   : > { %v626_v1 = vunpack.c.l.b16 %v321_v61  ;;  %v1161_v31 = vunpack.c.l.b16 %v1052_v27  ;;  %v1058_v17 = vrot.slane %v2844_v43, 5  ;;  %v1061_v60 = vrot.slane %v2847_v48, 5 }
  0x61   : > { %2404 = vmatmul.msk.bf16.gmra.mxu3 %vm668_vm4, %v3065_v53  ;;  %v331_v63 = vsel %vm2753_vm3, %v326_v13, %v330_v7  ;;  %v1055_v5 = vsel %vm3056_vm7, %v1053_v54, %v1054_v55  ;;  %v1065_v16 = vrot.slane %v2932_v56, 5  ;;  %v2487_v61 = vrot.slane %v2927_v52, 9 }
  0x62   : > { %v627_v59 = vunpack.c.l.b16 %v331_v63  ;;  %v1162_v8 = vunpack.c.l.b16 %v1055_v5  ;;  %v1059_v35 = vsel %vm3056_vm7, %v2486_v41, %v1058_v17  ;;  %v1060_v2 = vrot.slane %v1058_v17, 4  ;;  %v3122_v41 = vld [vmem:[%s2726_s27 + $0x24] sm:$0xff] }
  0x63   : > { %v1163_v7 = vunpack.c.l.b16 %v1059_v35  ;;  %v1067_v13 = vrot.slane %v1065_v16, 4  ;;  %v1068_v27 = vrot.slane %v2935_v57, 5  ;;  %v1072_v57 = vrot.slane %v3020_v33, 5 }
  0x64   : > { %v3083_v20 = vpack.c.b16 %v627_v59, %v626_v1  ;;  %v1193_v0 = vpack.c.b16 %v1162_v8, %v1161_v31  ;;  %v1062_v43 = vsel %vm3056_vm7, %v1060_v2, %v1061_v60  ;;  %v2488_v63 = vrot.slane %v3013_v40, 9  ;;  %v3144_v8 = vld [vmem:[%s2726_s27 + $0x30] sm:$0xff] }
  0x65   : > { %v1164_v48 = vunpack.c.l.b16 %v1062_v43  ;;  %v1069_v56 = vsel %vm3056_vm7, %v1067_v13, %v1068_v27  ;;  %v1074_v31 = vrot.slane %v1072_v57, 4  ;;  %v1075_v17 = vrot.slane %v3024_v39, 5  ;;  %v3172_v27 = vld [vmem:[%s2726_s27 + $0x3c] sm:$0xff] }
  0x66   : > { %2392 = vmatmul.msk.bf16.gmra.mxu0 %vm668_vm4, %v3083_v20  ;;  %v1166_v54 = vunpack.c.l.b16 %v1069_v56  ;;  %v1073_v60 = vsel %vm3056_vm7, %v2488_v63, %v1072_v57  ;;  %v1079_v39 = vrot.slane %v2732_v11, 5  ;;  %v2489_v35 = vrot.slane %v2729_v10, 9 }
  0x67   : > { %2469 = vmatmul.msk.bf16.vlgmr.msrb.gmra.mxu1 %vm668_vm4, %v2625_v22  ;;  %v3090_v55 = vpack.c.b16 %v1164_v48, %v1163_v7  ;;  %v1076_v33 = vsel %vm3056_vm7, %v1074_v31, %v1075_v17  ;;  %v1167_v59 = vunpack.c.l.b16 %v1073_v60  ;;  %v1082_v7 = vrot.slane %v2735_v12, 5 }
  0x68   : > { %v1168_v5 = vunpack.c.l.b16 %v1076_v33  ;;  %v1081_v2 = vrot.slane %v1079_v39, 4  ;;  %v1086_v13 = vrot.slane %v2792_v24, 5  ;;  %v2490_v56 = vrot.slane %v2789_v23, 9 }
  0x6a   : > { %v3136_v40 = vpack.c.b16 %v1168_v5, %v1167_v59  ;;  %v1083_v11 = vsel %vm3056_vm7, %v1081_v2, %v1082_v7  ;;  %v1087_v24 = vsel %vm3056_vm7, %v2490_v56, %v1086_v13  ;;  %v1093_v5 = vrot.slane %v2862_v3, 5 }
  0x6b   : > { %v1171_v23 = vunpack.c.l.b16 %v1087_v24  ;;  %v2491_v7 = vrot.slane %v2857_v58, 9  ;;  %v1100_v24 = vrot.slane %v2952_v32, 5 }
  0x6c   : > { %2501 = vmatmul.msk.bf16.vlgmr.msrb.gmra.mxu2 %vm668_vm4, %v1193_v0  ;;  %v1080_v0 = vsel %vm3056_vm7, %v2489_v35, %v1079_v39  ;;  %v3206_v35 = vld [vmem:[%s2726_s27 + $0x48] sm:$0xff] }
  0x6d   : > { %v1169_v48 = vunpack.c.l.b16 %v1080_v0  ;;  %3859 = vst [vmem:[#allocation18_spill] sm:$0xff] %v3206_v35  ;;  %v1095_v0 = vrot.slane %v1093_v5, 4 }
  0x71   : > { %2521 = vmatmul.msk.bf16.vlgmr.msrb.gmra.mxu3 %vm668_vm4, %v2626_v21 }
  0x76   : > { %2537 = vmatmul.msk.bf16.vlgmr.msrb.gmra.mxu0 %vm668_vm4, %v2905_v9  ;;  %v1066_v9 = vsel %vm3056_vm7, %v2487_v61, %v1065_v16 }
  0x77   : > { %2470 = vmatmul.msk.bf16.gmra.mxu1 %vm668_vm4, %v2626_v21  ;;  %v1165_v1 = vunpack.c.l.b16 %v1066_v9  ;;  %v1170_v21 = vunpack.c.l.b16 %v1083_v11  ;;  %v1096_v11 = vrot.slane %v2869_v15, 5 }
  0x79   : > { %v3116_v52 = vpack.c.b16 %v1166_v54, %v1165_v1  ;;  %v3164_v12 = vpack.c.b16 %v1170_v21, %v1169_v48  ;;  %v1088_v1 = vrot.slane %v1086_v13, 4  ;;  %v1089_v54 = vrot.slane %v2797_v29, 5 }
  0x7a   : > { %v1094_v21 = vsel %vm3056_vm7, %v2491_v7, %v1093_v5  ;;  %v1097_v13 = vsel %vm3056_vm7, %v1095_v0, %v1096_v11  ;;  %v2492_v5 = vrot.slane %v2947_v26, 9  ;;  %v1102_v7 = vrot.slane %v1100_v24, 4 }
  0x7b   : > { %v1090_v63 = vsel %vm3056_vm7, %v1088_v1, %v1089_v54  ;;  %v1173_v56 = vunpack.c.l.b16 %v1094_v21  ;;  %v1174_v1 = vunpack.c.l.b16 %v1097_v13  ;;  %v1103_v0 = vrot.slane %v2957_v46, 5 }
  0x7c   : > { %2502 = vmatmul.msk.bf16.gmra.mxu2 %vm668_vm4, %v3090_v55  ;;  %v1172_v60 = vunpack.c.l.b16 %v1090_v63  ;;  %v1101_v32 = vsel %vm3056_vm7, %v2492_v5, %v1100_v24  ;;  %v1107_v5 = vrot.slane %v2744_v19, 5 }
  0x7d   : > { %v3230_v54 = vpack.c.b16 %v1174_v1, %v1173_v56  ;;  %v1104_v13 = vsel %vm3056_vm7, %v1102_v7, %v1103_v0  ;;  %v1175_v56 = vunpack.c.l.b16 %v1101_v32  ;;  %v2656_v32 = vld [vmem:[%s2726_s27 + $0x68] sm:$0x1] }
  0x7e   : > { %v3196_v33 = vpack.c.b16 %v1172_v60, %v1171_v23  ;;  %v3240_v60 = vld [vmem:[%s2726_s27 + $0x54] sm:$0xff]  ;;  %v1176_v46 = vunpack.c.l.b16 %v1104_v13  ;;  %v1110_v13 = vrot.slane %v2656_v32, 5 }
  0x7f   : > { %3862 = vst [vmem:[#allocation21_spill] sm:$0xff] %v3230_v54 }
  0x80   : > { %3863 = vst [vmem:[#allocation22_spill] sm:$0xff] %v3240_v60 }
  0x81   : > { %2522 = vmatmul.msk.bf16.gmra.mxu3 %vm668_vm4, %v3102_v6 }
  0x86   : > { %2538 = vmatmul.msk.bf16.gmra.mxu0 %vm668_vm4, %v2993_v45 }
  0x87   : > { %2471 = vmatmul.msk.bf16.gmra.mxu1 %vm668_vm4, %v3102_v6 }
  0x8c   : > { %2503 = vmatmul.msk.bf16.gmra.mxu2 %vm668_vm4, %v3116_v52 }
  0x91   : > { %2523 = vmatmul.msk.bf16.gmra.mxu3 %vm668_vm4, %v3122_v41 }
  0x96   : > { %2539 = vmatmul.msk.bf16.gmra.mxu0 %vm668_vm4, %v3083_v20 }
  0x97   : > { %2472 = vmatmul.msk.bf16.gmra.mxu1 %vm668_vm4, %v3122_v41 }
  0x9c   : > { %v3139_v22 = vpop.f32.mrf.mxu1  ;;  %2504 = vmatmul.msk.bf16.gmra.mxu2 %vm668_vm4, %v3136_v40 }
  0xa1   : > { %2524 = vmatmul.msk.bf16.gmra.mxu3 %vm668_vm4, %v3144_v8 }
  0xa4   : > { %v3154_v43 = vpop.f32.mrf.mxu1 }
  0xa6   : > { %v3156_v16 = vpop.f32.mrf.mxu2  ;;  %2540 = vmatmul.msk.bf16.gmra.mxu0 %vm668_vm4, %v2765_v62 }
  0xa7   : > { %2473 = vmatmul.msk.bf16.gmra.mxu1 %vm668_vm4, %v3144_v8 }
  0xa9   : > { %v3162_v10 = vpop.f32.mrf.mxu0 }
  0xaa   : > { %v3166_v61 = vpop.f32.mrf.mxu3 }
  0xab   : > { %3857 = vst [vmem:[#allocation16_spill] sm:$0xff] %v3166_v61 }
  0xac   : > { %2505 = vmatmul.msk.bf16.gmra.mxu2 %vm668_vm4, %v3164_v12 }
  0xae   : > { %v3174_v9 = vpop.f32.mrf.mxu1  ;;  %v3178_v57 = vpop.f32.mrf.mxu2 }
  0xb1   : > { %2525 = vmatmul.msk.bf16.gmra.mxu3 %vm668_vm4, %v3172_v27  ;;  %v3186_v31 = vpop.f32.mrf.mxu0 }
  0xb2   : > { %v3188_v17 = vpop.f32.mrf.mxu3 }
  0xb3   : > { %3858 = vst [vmem:[#allocation17_spill] sm:$0xff] %v3188_v17 }
  0xb6   : > { %2541 = vmatmul.msk.bf16.gmra.mxu0 %vm668_vm4, %v2839_v37  ;;  %v3192_v29 = vpop.f32.mrf.mxu1 }
  0xb7   : > { %2474 = vmatmul.msk.bf16.gmra.mxu1 %vm668_vm4, %v3172_v27 }
  0xb9   : > { %v3198_v59 = vpop.f32.mrf.mxu2 }
  0xbc   : > { %2506 = vmatmul.msk.bf16.gmra.mxu2 %vm668_vm4, %v3196_v33 }
  0xbd   : > { %v3201_v39 = vpop.f32.mrf.mxu0 }
  0xbe   : > { %v3208_v2 = vpop.f32.mrf.mxu3 }
  0xbf   : > { %3860 = vst [vmem:[#allocation19_spill] sm:$0xff] %v3208_v2 }
  0xc0   : > { %v3212_v48 = vpop.f32.mrf.mxu1 }
  0xc1   : > { %2526 = vmatmul.msk.bf16.gmra.mxu3 %vm668_vm4, %v3206_v35  ;;  %v3216_v3 = vpop.f32.mrf.mxu2 }
  0xc5   : > { %v3222_v58 = vpop.f32.mrf.mxu0 }
  0xc6   : > { %2542 = vmatmul.msk.bf16.gmra.mxu0 %vm668_vm4, %v2924_v44  ;;  %v3226_v15 = vpop.f32.mrf.mxu3 }
  0xc7   : > { %3861 = vst [vmem:[#allocation20_spill] sm:$0xff] %v3226_v15  ;;  %2475 = vmatmul.msk.bf16.gmra.mxu1 %vm668_vm4, %v3206_v35  ;;  %v3275_v15 = vld [vmem:[%s2726_s27 + $0x60] sm:$0xff] }
  0xc8   : > { %v3233_v63 = vpop.f32.mrf.mxu1  ;;  %3867 = vst [vmem:[#allocation26_spill] sm:$0xff] %v3275_v15 }
  0xcc   : > { %v3235_v23 = vpop.f32.mrf.mxu2  ;;  %2507 = vmatmul.msk.bf16.gmra.mxu2 %vm668_vm4, %v3230_v54 }
  0xcf   : > { %v3244_v11 = vpop.f32.mrf.mxu0 }
  0xd0   : > { %v3246_v21 = vpop.f32.mrf.mxu3 }
  0xd1   : > { %3864 = vst [vmem:[#allocation23_spill] sm:$0xff] %v3246_v21  ;;  %2527 = vmatmul.msk.bf16.gmra.mxu3 %vm668_vm4, %v3240_v60  ;;  %v3262_v21 = vpack.c.b16 %v1176_v46, %v1175_v56 }
  0xd3   : > { %3865 = vst [vmem:[#allocation24_spill] sm:$0xff] %v3262_v21 }
  0xd4   : > { %v3254_v26 = vpop.f32.mrf.mxu1  ;;  %v3256_v1 = vpop.f32.mrf.mxu2 }
  0xd6   : > { %2543 = vmatmul.msk.bf16.gmra.mxu0 %vm668_vm4, %v3015_v42  ;;  %v2657_v42 = vld [vmem:[%s2726_s27 + $0x60] sm:$0xf] }
  0xd7   : > { %2476 = vmatmul.msk.bf16.gmra.mxu1 %vm668_vm4, %v3240_v60  ;;  %v3264_v24 = vpop.f32.mrf.mxu0  ;;  %v2493_v2 = vrot.slane %v2657_v42, 9  ;;  %v1109_v60 = vrot.slane %v1107_v5, 4 }
  0xd8   : > { %v3267_v7 = vpop.f32.mrf.mxu3 }
  0xd9   : > { %3866 = vst [vmem:[#allocation25_spill] sm:$0xff] %v3267_v7  ;;  %v1108_v19 = vsel %vm3056_vm7, %v2493_v2, %v1107_v5  ;;  %v1111_v46 = vsel %vm3056_vm7, %v1109_v60, %v1110_v13  ;;  %v1114_v60 = vrot.slane %v2812_v47, 5 }
  0xda   : > { %v1177_v17 = vunpack.c.l.b16 %v1108_v19  ;;  %v1178_v42 = vunpack.c.l.b16 %v1111_v46  ;;  %v3308_v19 = vld [vmem:[%s2726_s27 + $0x6c] sm:$0xff] }
  0xdc   : > { %2508 = vmatmul.msk.bf16.gmra.mxu2 %vm668_vm4, %v3262_v21  ;;  %v3271_v0 = vpop.f32.mrf.mxu1  ;;  %v3297_v2 = vpack.c.b16 %v1178_v42, %v1177_v17  ;;  %v1116_v17 = vrot.slane %v1114_v60, 4 }
  0xde   : > { %3869 = vst [vmem:[#allocation28_spill] sm:$0xff] %v3297_v2 }
  0xdf   : > { %v3278_v56 = vpop.f32.mrf.mxu2 }
  0xe1   : > { %2528 = vmatmul.msk.bf16.gmra.mxu3 %vm668_vm4, %v3275_v15 }
  0xe3   : > { %v3286_v7 = vpop.f32.mrf.mxu0 }
  0xe4   : > { %v3288_v32 = vpop.f32.mrf.mxu3  ;;  %v950_v21 = vpop.f32.mrf.mxu1 }
  0xe5   : > { %3868 = vst [vmem:[#allocation27_spill] sm:$0xff] %v3288_v32  ;;  %v951_v54 = vadd.f32 %v950_v21, %v3162_v10  ;;  %v1117_v21 = vrot.slane %v2819_v51, 5  ;;  %v2494_v32 = vrot.slane %v2805_v38, 9 }
  0xe6   : > { %2544 = vmatmul.msk.bf16.gmra.mxu0 %vm668_vm4, %v2784_v18 }
  0xe7   : > { %v3293_v44 = vpop.f32.mrf.mxu2  ;;  %2477 = vmatmul.msk.bf16.gmra.mxu1 %vm668_vm4, %v3275_v15  ;;  %v1115_v47 = vsel %vm3056_vm7, %v2494_v32, %v1114_v60 }
  0xe8   : > { %v1179_v61 = vunpack.c.l.b16 %v1115_v47 }
  0xeb   : > { %v3300_v5 = vpop.f32.mrf.mxu0 }
  0xec   : > { %v3302_v13 = vpop.f32.mrf.mxu3  ;;  %2509 = vmatmul.msk.bf16.gmra.mxu2 %vm668_vm4, %v3297_v2  ;;  %v952_v10 = vpop.f32.mrf.mxu1 }
  0xed   : > { %3870 = vst [vmem:[#allocation29_spill] sm:$0xff] %v3302_v13  ;;  %v953_v46 = vadd.f32 %v952_v10, %v3186_v31  ;;  %v1118_v13 = vsel %vm3056_vm7, %v1116_v17, %v1117_v21  ;;  %v1121_v21 = vrot.slane %v2884_v34, 5 }
  0xee   : > { %v1180_v35 = vunpack.c.l.b16 %v1118_v13  ;;  %v1124_v13 = vrot.slane %v2891_v50, 5 }
  0xef   : > { %v1269_v42 = vpop.f32.mrf.mxu2 }
  0xf0   : > { %v1349_v18 = vadd.f32 %v1269_v42, %v951_v54  ;;  %v3325_v10 = vpack.c.b16 %v1180_v35, %v1179_v61  ;;  %v3332_v42 = vld [vmem:[%s2726_s27 + $0x78] sm:$0xff] }
  0xf1   : > { %2529 = vmatmul.msk.bf16.gmra.mxu3 %vm668_vm4, %v3308_v19 }
  0xf3   : > { %v1555_v2 = vpop.f32.mrf.mxu0 }
  0xf4   : > { %v1401_v51 = vpop.f32.mrf.mxu3  ;;  %v955_v15 = vpop.f32.mrf.mxu1 }
  0xf5   : > { %v1481_v31 = vadd.f32 %v1401_v51, %v1349_v18  ;;  %v956_v38 = vadd.f32 %v955_v15, %v3201_v39 }
  0xf6   : > { %2545 = vmatmul.msk.bf16.gmra.mxu0 %vm668_vm4, %v2864_v4 }
  0xf7   : > { %v1271_v54 = vpop.f32.mrf.mxu2  ;;  %2478 = vmatmul.msk.bf16.gmra.mxu1 %vm668_vm4, %v3308_v19  ;;  %v3323_v32 = vadd.f32 %v1555_v2, %v1481_v31  ;;  %v2495_v2 = vrot.slane %v2880_v28, 9 }
  0xf8   : > { %v1350_v60 = vadd.f32 %v1271_v54, %v953_v46  ;;  %v1123_v46 = vrot.slane %v1121_v21, 4 }
  0xf9   : > { %v1122_v50 = vsel %vm3056_vm7, %v2495_v2, %v1121_v21 }
  0xfa   : > { %v1125_v51 = vsel %vm3056_vm7, %v1123_v46, %v1124_v13  ;;  %v1131_v46 = vrot.slane %v2979_v49, 5 }
  0xfb   : > { %v1557_v17 = vpop.f32.mrf.mxu0 }
  0xfc   : > { %v1403_v18 = vpop.f32.mrf.mxu3  ;;  %2510 = vmatmul.msk.bf16.gmra.mxu2 %vm668_vm4, %v3325_v10  ;;  %v957_v39 = vpop.f32.mrf.mxu1 }
  0xfd   : > { %v1482_v15 = vadd.f32 %v1403_v18, %v1350_v60  ;;  %v958_v47 = vadd.f32 %v957_v39, %v3222_v58  ;;  %v1181_v58 = vunpack.c.l.b16 %v1122_v50  ;;  %v1182_v18 = vunpack.c.l.b16 %v1125_v51  ;;  %v3358_v50 = vld [vmem:[%s2726_s27 + $0x84] sm:$0xff] }
  0xff   : > { %v1274_v61 = vpop.f32.mrf.mxu2  ;;  %v3336_v35 = vadd.f32 %v1557_v17, %v1482_v15  ;;  %v3351_v13 = vpack.c.b16 %v1182_v18, %v1181_v58  ;;  %v1128_v15 = vrot.slane %v2974_v30, 5 }
 0x100   : > { %v1351_v34 = vadd.f32 %v1274_v61, %v956_v38 }
 0x101   : > { %2530 = vmatmul.msk.bf16.gmra.mxu3 %vm668_vm4, %v3332_v42 }
 0x103   : > { %v1560_v31 = vpop.f32.mrf.mxu0 }
 0x104   : > { %v1406_v54 = vpop.f32.mrf.mxu3  ;;  %v960_v60 = vpop.f32.mrf.mxu1 }
 0x105   : > { %v1483_v28 = vadd.f32 %v1406_v54, %v1351_v34  ;;  %v961_v17 = vadd.f32 %v960_v60, %v3244_v11 }
 0x106   : > { %2546 = vmatmul.msk.bf16.gmra.mxu0 %vm668_vm4, %v2949_v25 }
 0x107   : > { %v1276_v38 = vpop.f32.mrf.mxu2  ;;  %2479 = vmatmul.msk.bf16.gmra.mxu1 %vm668_vm4, %v3332_v42  ;;  %v3349_v21 = vadd.f32 %v1560_v31, %v1483_v28  ;;  %v3871_v31 = vld [vmem:[#allocation9_spill] sm:$0xff] }
 0x108   : > { %v1352_v39 = vadd.f32 %v1276_v38, %v958_v47  ;;  %v2496_v54 = vrot.slane %v3871_v31, 9  ;;  %v1130_v47 = vrot.slane %v1128_v15, 4 }
 0x10a   : > { %v1129_v49 = vsel %vm3056_vm7, %v2496_v54, %v1128_v15  ;;  %v1132_v18 = vsel %vm3056_vm7, %v1130_v47, %v1131_v46  ;;  %v2658_v54 = vld [vmem:[%s2726_s27 + $0x94] sm:$0xf] }
 0x10b   : > { %v1562_v2 = vpop.f32.mrf.mxu0  ;;  %v1135_v47 = vrot.slane %v2658_v54, 5 }
 0x10c   : > { %v1408_v61 = vpop.f32.mrf.mxu3  ;;  %2511 = vmatmul.msk.bf16.gmra.mxu2 %vm668_vm4, %v3351_v13  ;;  %v962_v11 = vpop.f32.mrf.mxu1 }
 0x10d   : > { %v1484_v34 = vadd.f32 %v1408_v61, %v1352_v39  ;;  %v963_v51 = vadd.f32 %v962_v11, %v3264_v24  ;;  %v1183_v39 = vunpack.c.l.b16 %v1129_v49  ;;  %v1184_v61 = vunpack.c.l.b16 %v1132_v18 }
 0x10f   : > { %v1279_v60 = vpop.f32.mrf.mxu2  ;;  %v3362_v58 = vadd.f32 %v1562_v2, %v1484_v34  ;;  %v3377_v31 = vpack.c.b16 %v1184_v61, %v1183_v39 }
 0x110   : > { %v1353_v30 = vadd.f32 %v1279_v60, %v961_v17  ;;  %v3873_v17 = vld [vmem:[#allocation15_spill] sm:$0xff] }
 0x111   : > { %3872 = vst [vmem:[#allocation9_spill] sm:$0xff] %v3362_v58  ;;  %2531 = vmatmul.msk.bf16.gmra.mxu3 %vm668_vm4, %v3358_v50 }
 0x112   : > { %3875 = vst [vmem:[#allocation31_spill] sm:$0xff] %v3377_v31 }
 0x113   : > { %v1565_v28 = vpop.f32.mrf.mxu0 }
 0x114   : > { %v1411_v24 = vpop.f32.mrf.mxu3  ;;  %v965_v38 = vpop.f32.mrf.mxu1 }
 0x115   : > { %v1485_v11 = vadd.f32 %v1411_v24, %v1353_v30  ;;  %v966_v2 = vadd.f32 %v965_v38, %v3286_v7  ;;  %v2659_v30 = vld [vmem:[%s2726_s27 + $0x98] sm:$0x1]  ;;  %v3384_v38 = vld [vmem:[%s2726_s27 + $0x90] sm:$0xff] }
 0x116   : > { %2547 = vmatmul.msk.bf16.gmra.mxu0 %vm668_vm4, %v3873_v17  ;;  %v1138_v49 = vrot.slane %v2659_v30, 5  ;;  %3876 = vst [vmem:[#allocation32_spill] sm:$0xff] %v3384_v38 }
 0x117   : > { %v1281_v34 = vpop.f32.mrf.mxu2  ;;  %2480 = vmatmul.msk.bf16.gmra.mxu1 %vm668_vm4, %v3358_v50  ;;  %v3375_v15 = vadd.f32 %v1565_v28, %v1485_v11  ;;  %v2660_v28 = vld [vmem:[%s2726_s27 + $0x90] sm:$0xf] }
 0x118   : > { %v1354_v46 = vadd.f32 %v1281_v34, %v963_v51  ;;  %v2497_v11 = vrot.slane %v2660_v28, 9  ;;  %v1137_v51 = vrot.slane %v1135_v47, 4 }
 0x119   : > { %3874 = vst [vmem:[#allocation30_spill] sm:$0xff] %v3375_v15  ;;  %v2663_v15 = vld [vmem:[%s2726_s27 + $0x9c] sm:$0xf] }
 0x11a   : > { %v1136_v54 = vsel %vm3056_vm7, %v2497_v11, %v1135_v47  ;;  %v2661_v11 = vld [vmem:[%s2726_s27 + $0xa0] sm:$0xf] }
 0x11b   : > { %v1567_v60 = vpop.f32.mrf.mxu0 }
 0x11c   : > { %v1413_v7 = vpop.f32.mrf.mxu3  ;;  %2512 = vmatmul.msk.bf16.gmra.mxu2 %vm668_vm4, %v3377_v31  ;;  %v967_v18 = vpop.f32.mrf.mxu1 }
 0x11d   : > { %v1486_v24 = vadd.f32 %v1413_v7, %v1354_v46  ;;  %v968_v17 = vadd.f32 %v967_v18, %v3300_v5  ;;  %v1139_v46 = vsel %vm3056_vm7, %v1137_v51, %v1138_v49  ;;  %v1185_v18 = vunpack.c.l.b16 %v1136_v54 }
 0x11e   : > { %v1186_v28 = vunpack.c.l.b16 %v1139_v46  ;;  %v1142_v51 = vrot.slane %v2661_v11, 5  ;;  %v2662_v46 = vld [vmem:[%s2726_s27 + $0xa4] sm:$0x1] }
 0x11f   : > { %v1284_v39 = vpop.f32.mrf.mxu2  ;;  %v3388_v61 = vadd.f32 %v1567_v60, %v1486_v24  ;;  %v3878_v60 = vld [vmem:[#allocation3_spill] sm:$0xff] }
 0x120   : > { %v1355_v34 = vadd.f32 %v1284_v39, %v966_v2  ;;  %v3402_v49 = vpack.c.b16 %v1186_v28, %v1185_v18 }
 0x121   : > { %3877 = vst [vmem:[#allocation33_spill] sm:$0xff] %v3388_v61  ;;  %2532 = vmatmul.msk.bf16.gmra.mxu3 %vm668_vm4, %v3384_v38  ;;  %v3409_v61 = vld [vmem:[%s2726_s27 + $0x9c] sm:$0xff] }
 0x122   : > { %3880 = vst [vmem:[#allocation35_spill] sm:$0xff] %v3402_v49 }
 0x123   : > { %v1570_v30 = vpop.f32.mrf.mxu0  ;;  %3881 = vst [vmem:[#allocation36_spill] sm:$0xff] %v3409_v61 }
 0x124   : > { %v1416_v7 = vpop.f32.mrf.mxu3  ;;  %v970_v5 = vpop.f32.mrf.mxu1 }
 0x125   : > { %v1487_v31 = vadd.f32 %v1416_v7, %v1355_v34  ;;  %v1145_v7 = vrot.slane %v2662_v46, 5 }
 0x126   : > { %2548 = vmatmul.msk.bf16.gmra.mxu0 %vm668_vm4, %v3878_v60 }
 0x127   : > { %v1286_v2 = vpop.f32.mrf.mxu2  ;;  %2481 = vmatmul.msk.bf16.gmra.mxu1 %vm668_vm4, %v3384_v38  ;;  %v3400_v47 = vadd.f32 %v1570_v30, %v1487_v31  ;;  %v2498_v38 = vrot.slane %v2663_v15, 9  ;;  %v1144_v31 = vrot.slane %v1142_v51, 4 }
 0x128   : > { %v1356_v24 = vadd.f32 %v1286_v2, %v968_v17  ;;  %v971_v17 = vadd.f32 %v970_v5, %v3139_v22  ;;  %v3883_v5 = vld [vmem:[#allocation4_spill] sm:$0xff] }
 0x129   : > { %3879 = vst [vmem:[#allocation34_spill] sm:$0xff] %v3400_v47  ;;  %v1143_v2 = vsel %vm3056_vm7, %v2498_v38, %v1142_v51 }
 0x12a   : > { %v1187_v15 = vunpack.c.l.b16 %v1143_v2 }
 0x12b   : > { %v1572_v39 = vpop.f32.mrf.mxu0 }
 0x12c   : > { %v1418_v54 = vpop.f32.mrf.mxu3  ;;  %2513 = vmatmul.msk.bf16.gmra.mxu2 %vm668_vm4, %v3402_v49  ;;  %v972_v34 = vpop.f32.mrf.mxu1 }
 0x12d   : > { %v1488_v60 = vadd.f32 %v1418_v54, %v1356_v24  ;;  %v1146_v24 = vsel %vm3056_vm7, %v1144_v31, %v1145_v7  ;;  %v3886_v31 = vld [vmem:[#allocation6_spill] sm:$0xff] }
 0x12e   : > { %v1188_v49 = vunpack.c.l.b16 %v1146_v24  ;;  %v3887_v24 = vld [vmem:[#allocation7_spill] sm:$0xff] }
 0x12f   : > { %v1289_v30 = vpop.f32.mrf.mxu2  ;;  %v3413_v18 = vadd.f32 %v1572_v39, %v1488_v60  ;;  %v973_v60 = vadd.f32 %v972_v34, %v3154_v43  ;;  %v3435_v34 = vld [vmem:[%s2726_s27 + $0xa8] sm:$0xff] }
 0x130   : > { %v1357_v28 = vadd.f32 %v1289_v30, %v971_v17  ;;  %v3428_v7 = vpack.c.b16 %v1188_v49, %v1187_v15  ;;  %v1149_v17 = vrot.slane %v3886_v31, 5  ;;  %3888 = vst [vmem:[#allocation6_spill] sm:$0xff] %v3435_v34 }
 0x131   : > { %3882 = vst [vmem:[#allocation37_spill] sm:$0xff] %v3413_v18  ;;  %2533 = vmatmul.msk.bf16.gmra.mxu3 %vm668_vm4, %v3409_v61 }
 0x132   : > { %3885 = vst [vmem:[#allocation39_spill] sm:$0xff] %v3428_v7 }
 0x133   : > { %v1575_v11 = vpop.f32.mrf.mxu0 }
 0x134   : > { %v1421_v54 = vpop.f32.mrf.mxu3  ;;  %v975_v46 = vpop.f32.mrf.mxu1 }
 0x135   : > { %v1489_v22 = vadd.f32 %v1421_v54, %v1357_v28  ;;  %v1152_v54 = vrot.slane %v3887_v24, 5 }
 0x136   : > { %2549 = vmatmul.msk.bf16.gmra.mxu0 %vm668_vm4, %v3883_v5  ;;  %v3889_v5 = vld [vmem:[#allocation5_spill] sm:$0xff] }
 0x137   : > { %v1291_v39 = vpop.f32.mrf.mxu2  ;;  %2482 = vmatmul.msk.bf16.gmra.mxu1 %vm668_vm4, %v3409_v61  ;;  %v3426_v38 = vadd.f32 %v1575_v11, %v1489_v22  ;;  %v2499_v18 = vrot.slane %v3889_v5, 9  ;;  %v1151_v11 = vrot.slane %v1149_v17, 4  ;;  %v976_v22 = vadd.f32 %v975_v46, %v3174_v9 }
 0x138   : > { %v1358_v51 = vadd.f32 %v1291_v39, %v973_v60 }
 0x139   : > { %3884 = vst [vmem:[#allocation38_spill] sm:$0xff] %v3426_v38  ;;  %v1150_v39 = vsel %vm3056_vm7, %v2499_v18, %v1149_v17  ;;  %v3453_v18 = vld [vmem:[%s2726_s27 + $0xc0] sm:$0xf] }
 0x13a   : > { %v1189_v24 = vunpack.c.l.b16 %v1150_v39  ;;  %3892 = vst [vmem:[#allocation5_spill] sm:$0xff] %v3453_v18  ;;  %v1514_v39 = vshrl.u32 %v3453_v18, 16 }
 0x13b   : > { %v1577_v30 = vpop.f32.mrf.mxu0 }
 0x13c   : > { %v1423_v2 = vpop.f32.mrf.mxu3  ;;  %2514 = vmatmul.msk.bf16.gmra.mxu2 %vm668_vm4, %v3428_v7  ;;  %v977_v28 = vpop.f32.mrf.mxu1  ;;  %v3891_v7 = vld [vmem:[#allocation10_spill] sm:$0xff] }
 0x13d   : > { %v1490_v43 = vadd.f32 %v1423_v2, %v1358_v51  ;;  %v1153_v51 = vsel %vm3056_vm7, %v1151_v11, %v1152_v54 }
 0x13e   : > { %v1190_v9 = vunpack.c.l.b16 %v1153_v51 }
 0x13f   : > { %v1294_v49 = vpop.f32.mrf.mxu2  ;;  %v3439_v15 = vadd.f32 %v1577_v30, %v1490_v43  ;;  %v978_v30 = vadd.f32 %v977_v28, %v3192_v29  ;;  %v1517_v29 = vshll.u32 %v3453_v18, 16 }
 0x140   : > { %v1359_v60 = vadd.f32 %v1294_v49, %v976_v22  ;;  %v3457_v11 = vpack.c.b16 %v1190_v9, %v1189_v24  ;;  %v3460_v22 = vld [vmem:[%s2726_s27 + $0xc4] sm:$0xf]  ;;  %v3896_v49 = vld [vmem:[#allocation12_spill] sm:$0xff]  ;;  %v3897_v24 = vld [vmem:[#allocation13_spill] sm:$0xff] }
 0x141   : > { %3890 = vst [vmem:[#allocation7_spill] sm:$0xff] %v3439_v15  ;;  %2534 = vmatmul.msk.bf16.gmra.mxu3 %vm668_vm4, %v3435_v34  ;;  %v1523_v28 = vshll.u32 %v3460_v22, 16  ;;  %v1159_v9 = vrot.slane %v3897_v24, 5  ;;  %v1516_v15 = vrot.slane %v1514_v39, 4  ;;  %v1519_v38 = vrot.slane %v1517_v29, 5 }
 0x142   : > { %3894 = vst [vmem:[#allocation41_spill] sm:$0xff] %v3457_v11 }
 0x143   : > { %v1580_v31 = vpop.f32.mrf.mxu0  ;;  %3895 = vst [vmem:[#allocation42_spill] sm:$0xff] %v3460_v22 }
 0x144   : > { %v1426_v5 = vpop.f32.mrf.mxu3  ;;  %v980_v2 = vpop.f32.mrf.mxu1 }
 0x145   : > { %v1491_v46 = vadd.f32 %v1426_v5, %v1359_v60  ;;  %v1156_v60 = vrot.slane %v3896_v49, 5  ;;  %v1527_v5 = vshrl.u32 %v3460_v22, 16  ;;  %v981_v18 = vadd.f32 %v980_v2, %v3212_v48 }
 0x146   : > { %2550 = vmatmul.msk.bf16.gmra.mxu0 %vm668_vm4, %v3891_v7  ;;  %v1525_v22 = vrot.slane %v1523_v28, 5  ;;  %v1520_v2 = vor.u32 %v1519_v38, %v1516_v15 }
 0x147   : > { %v1296_v43 = vpop.f32.mrf.mxu2  ;;  %2483 = vmatmul.msk.bf16.gmra.mxu1 %vm668_vm4, %v3435_v34  ;;  %v3455_v17 = vadd.f32 %v1580_v31, %v1491_v46  ;;  %v1529_v61 = vrot.slane %v1527_v5, 4 }
 0x148   : > { %v1360_v54 = vadd.f32 %v1296_v43, %v978_v30  ;;  %v3471_v30 = vld [vmem:[%s2726_s27 + $0xb4] sm:$0xff]  ;;  %v3898_v43 = vld [vmem:[#allocation11_spill] sm:$0xff] }
 0x149   : > { %3893 = vst [vmem:[#allocation40_spill] sm:$0xff] %v3455_v17  ;;  %v2500_v49 = vrot.slane %v3898_v43, 9  ;;  %v1158_v17 = vrot.slane %v1156_v60, 4  ;;  %v1530_v39 = vor.u32 %v1529_v61, %v1525_v22 }
 0x14b   : > { %v1582_v51 = vpop.f32.mrf.mxu0  ;;  %v1531_v38 = vrot.slane %v1530_v39, 4 }
 0x14c   : > { %v1428_v7 = vpop.f32.mrf.mxu3  ;;  %2515 = vmatmul.msk.bf16.gmra.mxu2 %vm668_vm4, %v3457_v11  ;;  %v982_v31 = vpop.f32.mrf.mxu1  ;;  %v3478_v11 = vld [vmem:[%s2726_s27 + $0xc8] sm:$0x1] }
 0x14d   : > { %v1492_v46 = vadd.f32 %v1428_v7, %v1360_v54  ;;  %v1157_v7 = vsel %vm3056_vm7, %v2500_v49, %v1156_v60  ;;  %v1160_v54 = vsel %vm3056_vm7, %v1158_v17, %v1159_v9  ;;  %v1533_v29 = vshll.u32 %v3478_v11, 16 }
 0x14e   : > { %v1191_v5 = vunpack.c.l.b16 %v1157_v7  ;;  %v983_v24 = vadd.f32 %v982_v31, %v3233_v63  ;;  %v1521_v17 = vrot.slane %v1520_v2, 4 }
 0x14f   : > { %v1299_v34 = vpop.f32.mrf.mxu2  ;;  %v3475_v47 = vadd.f32 %v1582_v51, %v1492_v46  ;;  %v1535_v61 = vrot.slane %v1533_v29, 5 }
 0x150   : > { %v1361_v58 = vadd.f32 %v1299_v34, %v981_v18  ;;  %v1192_v34 = vunpack.c.l.b16 %v1160_v54  ;;  %v3503_v54 = vld [vmem:[%s2726_s27 + $0xc0] sm:$0xff] }
 0x151   : > { %2535 = vmatmul.msk.bf16.gmra.mxu3 %vm668_vm4, %v3471_v30  ;;  %v1536_v63 = vsel %vm2753_vm3, %v1531_v38, %v1535_v61 }
 0x152   : > { %v3494_v46 = vpack.c.b16 %v1192_v34, %v1191_v5  ;;  %v1538_v39 = vunpack.c.l.b16 %v1536_v63 }
 0x153   : > { %v1585_v48 = vpop.f32.mrf.mxu0 }
 0x154   : > { %v1431_v28 = vpop.f32.mrf.mxu3  ;;  %v985_v51 = vpop.f32.mrf.mxu1 }
 0x155   : > { %v1493_v18 = vadd.f32 %v1431_v28, %v1361_v58  ;;  %v1526_v58 = vsel %vm2753_vm3, %v1521_v17, %v1525_v22 }
 0x156   : > { %2551 = vmatmul.msk.bf16.gmra.mxu0 %vm668_vm4, %v3065_v53  ;;  %v1537_v2 = vunpack.c.l.b16 %v1526_v58 }
 0x157   : > { %v1301_v60 = vpop.f32.mrf.mxu2  ;;  %2484 = vmatmul.msk.bf16.gmra.mxu1 %vm668_vm4, %v3471_v30  ;;  %v3492_v15 = vadd.f32 %v1585_v48, %v1493_v18  ;;  %v986_v48 = vadd.f32 %v985_v51, %v3254_v26 }
 0x158   : > { %v1362_v9 = vadd.f32 %v1301_v60, %v983_v24  ;;  %v3510_v22 = vpack.c.b16 %v1538_v39, %v1537_v2 }
 0x15b   : > { %v1587_v43 = vpop.f32.mrf.mxu0 }
 0x15c   : > { %v1433_v31 = vpop.f32.mrf.mxu3  ;;  %2516 = vmatmul.msk.bf16.gmra.mxu2 %vm668_vm4, %v3494_v46  ;;  %v987_v49 = vpop.f32.mrf.mxu1 }
 0x15d   : > { %v1494_v7 = vadd.f32 %v1433_v31, %v1362_v9  ;;  %v988_v26 = vadd.f32 %v987_v49, %v3271_v0 }
 0x15f   : > { %v1304_v29 = vpop.f32.mrf.mxu2  ;;  %v3506_v28 = vadd.f32 %v1587_v43, %v1494_v7 }
 0x160   : > { %v1363_v5 = vadd.f32 %v1304_v29, %v986_v48 }
 0x161   : > { %2536 = vmatmul.msk.bf16.gmra.mxu3 %vm668_vm4, %v3503_v54 }
 0x163   : > { %v1590_v34 = vpop.f32.mrf.mxu0 }
 0x164   : > { %v1436_v18 = vpop.f32.mrf.mxu3  ;;  %v990_v24 = vpop.f32.mrf.mxu1 }
 0x165   : > { %v1495_v60 = vadd.f32 %v1436_v18, %v1363_v5  ;;  %v991_v63 = vadd.f32 %v990_v24, %v3156_v16 }
 0x166   : > { %2552 = vmatmul.msk.bf16.gmra.mxu0 %vm668_vm4, %v3510_v22 }
 0x167   : > { %v1306_v51 = vpop.f32.mrf.mxu2  ;;  %2554 = vmatmul.msk.bf16.vlgmr.msra.gmra.mxu1 %vm668_vm4, %v3090_v55  ;;  %v3517_v17 = vadd.f32 %v1590_v34, %v1495_v60 }
 0x168   : > { %v1364_v38 = vadd.f32 %v1306_v51, %v988_v26 }
 0x16b   : > { %v1592_v61 = vpop.f32.mrf.mxu0 }
 0x16c   : > { %v1438_v9 = vpop.f32.mrf.mxu3  ;;  %2574 = vmatmul.msk.bf16.vlgmr.msra.gmra.mxu2 %vm668_vm4, %v3102_v6  ;;  %v992_v43 = vpop.f32.mrf.mxu1 }
 0x16d   : > { %v1496_v58 = vadd.f32 %v1438_v9, %v1364_v38  ;;  %v993_v6 = vadd.f32 %v992_v43, %v3178_v57 }
 0x16f   : > { %v1309_v31 = vpop.f32.mrf.mxu2  ;;  %v3522_v7 = vadd.f32 %v1592_v61, %v1496_v58 }
 0x170   : > { %v1365_v0 = vadd.f32 %v1309_v31, %v991_v63 }
 0x171   : > { %2590 = vmatmul.msk.bf16.vlgmr.msra.gmra.mxu3 %vm668_vm4, %v2993_v45 }
 0x173   : > { %v1595_v55 = vpop.f32.mrf.mxu0 }
 0x174   : > { %v1441_v49 = vpop.f32.mrf.mxu3  ;;  %v995_v48 = vpop.f32.mrf.mxu1 }
 0x175   : > { %v1497_v2 = vadd.f32 %v1441_v49, %v1365_v0  ;;  %v996_v24 = vadd.f32 %v995_v48, %v3198_v59 }
 0x176   : > { %2607 = vmatmul.msk.bf16.vlgmr.msra.gmra.mxu0 %vm668_vm4, %v3116_v52 }
 0x177   : > { %v1311_v39 = vpop.f32.mrf.mxu2  ;;  %2555 = vmatmul.msk.bf16.gmra.mxu1 %vm668_vm4, %v3116_v52  ;;  %v3531_v16 = vadd.f32 %v1595_v55, %v1497_v2 }
 0x178   : > { %v1366_v29 = vadd.f32 %v1311_v39, %v993_v6 }
 0x17b   : > { %v1597_v5 = vpop.f32.mrf.mxu0 }
 0x17c   : > { %v1443_v34 = vpop.f32.mrf.mxu3  ;;  %2575 = vmatmul.msk.bf16.gmra.mxu2 %vm668_vm4, %v3122_v41  ;;  %v997_v45 = vpop.f32.mrf.mxu1 }
 0x17d   : > { %v1498_v18 = vadd.f32 %v1443_v34, %v1366_v29  ;;  %v998_v41 = vadd.f32 %v997_v45, %v3216_v3 }
 0x17f   : > { %v1314_v60 = vpop.f32.mrf.mxu2  ;;  %v3536_v26 = vadd.f32 %v1597_v5, %v1498_v18 }
 0x180   : > { %v1367_v57 = vadd.f32 %v1314_v60, %v996_v24 }
 0x181   : > { %2591 = vmatmul.msk.bf16.gmra.mxu3 %vm668_vm4, %v3083_v20 }
 0x183   : > { %v1600_v52 = vpop.f32.mrf.mxu0 }
 0x184   : > { %v1446_v51 = vpop.f32.mrf.mxu3  ;;  %v1000_v38 = vpop.f32.mrf.mxu1 }
 0x185   : > { %v1499_v61 = vadd.f32 %v1446_v51, %v1367_v57  ;;  %v1001_v0 = vadd.f32 %v1000_v38, %v3235_v23 }
 0x186   : > { %2608 = vmatmul.msk.bf16.gmra.mxu0 %vm668_vm4, %v3136_v40 }
 0x187   : > { %v1316_v9 = vpop.f32.mrf.mxu2  ;;  %2556 = vmatmul.msk.bf16.gmra.mxu1 %vm668_vm4, %v3136_v40  ;;  %v3545_v59 = vadd.f32 %v1600_v52, %v1499_v61 }
 0x188   : > { %v1368_v43 = vadd.f32 %v1316_v9, %v998_v41 }
 0x18b   : > { %v1602_v58 = vpop.f32.mrf.mxu0 }
 0x18c   : > { %v1448_v63 = vpop.f32.mrf.mxu3  ;;  %2576 = vmatmul.msk.bf16.gmra.mxu2 %vm668_vm4, %v3144_v8  ;;  %v1002_v20 = vpop.f32.mrf.mxu1 }
 0x18d   : > { %v1500_v31 = vadd.f32 %v1448_v63, %v1368_v43  ;;  %v1003_v8 = vadd.f32 %v1002_v20, %v3256_v1  ;;  %v3899_v43 = vld [vmem:[#allocation18_spill] sm:$0xff]  ;;  %v3900_v63 = vld [vmem:[#allocation16_spill] sm:$0xff] }
 0x18f   : > { %v1319_v55 = vpop.f32.mrf.mxu2  ;;  %v3550_v49 = vadd.f32 %v1602_v58, %v1500_v31 }
 0x190   : > { %v1369_v3 = vadd.f32 %v1319_v55, %v1001_v0  ;;  %v3901_v55 = vld [vmem:[#allocation8_spill] sm:$0xff] }
 0x191   : > { %2592 = vmatmul.msk.bf16.gmra.mxu3 %vm668_vm4, %v2765_v62 }
 0x193   : > { %v1605_v40 = vpop.f32.mrf.mxu0 }
 0x194   : > { %v1451_v48 = vpop.f32.mrf.mxu3  ;;  %v1005_v2 = vpop.f32.mrf.mxu1 }
 0x195   : > { %v1501_v6 = vadd.f32 %v1451_v48, %v1369_v3  ;;  %v1006_v18 = vadd.f32 %v1005_v2, %v3278_v56  ;;  %v3902_v2 = vld [vmem:[#allocation21_spill] sm:$0xff] }
 0x196   : > { %2609 = vmatmul.msk.bf16.gmra.mxu0 %vm668_vm4, %v3164_v12 }
 0x197   : > { %v1321_v39 = vpop.f32.mrf.mxu2  ;;  %2557 = vmatmul.msk.bf16.gmra.mxu1 %vm668_vm4, %v3164_v12  ;;  %v3559_v23 = vadd.f32 %v1605_v40, %v1501_v6  ;;  %v3903_v6 = vld [vmem:[#allocation17_spill] sm:$0xff] }
 0x198   : > { %v1370_v29 = vadd.f32 %v1321_v39, %v1003_v8 }
 0x19b   : > { %v1607_v5 = vpop.f32.mrf.mxu0 }
 0x19c   : > { %v1453_v34 = vpop.f32.mrf.mxu3  ;;  %2577 = vmatmul.msk.bf16.gmra.mxu2 %vm668_vm4, %v3172_v27  ;;  %v1007_v62 = vpop.f32.mrf.mxu1 }
 0x19d   : > { %v1502_v45 = vadd.f32 %v1453_v34, %v1370_v29  ;;  %v1008_v27 = vadd.f32 %v1007_v62, %v3293_v44 }
 0x19f   : > { %v1324_v24 = vpop.f32.mrf.mxu2  ;;  %v3564_v60 = vadd.f32 %v1607_v5, %v1502_v45  ;;  %v3904_v45 = vld [vmem:[#allocation22_spill] sm:$0xff] }
 0x1a0   : > { %v1371_v1 = vadd.f32 %v1324_v24, %v1006_v18 }
 0x1a1   : > { %2593 = vmatmul.msk.bf16.gmra.mxu3 %vm668_vm4, %v2839_v37 }
 0x1a3   : > { %v1610_v12 = vpop.f32.mrf.mxu0 }
 0x1a4   : > { %v1456_v57 = vpop.f32.mrf.mxu3  ;;  %v1010_v52 = vpop.f32.mrf.mxu1 }
 0x1a5   : > { %v1503_v51 = vadd.f32 %v1456_v57, %v1371_v1  ;;  %v1011_v20 = vadd.f32 %v1010_v52, %v3900_v63  ;;  %v3905_v1 = vld [vmem:[#allocation19_spill] sm:$0xff] }
 0x1a6   : > { %2610 = vmatmul.msk.bf16.gmra.mxu0 %vm668_vm4, %v3196_v33 }
 0x1a7   : > { %v1326_v38 = vpop.f32.mrf.mxu2  ;;  %2558 = vmatmul.msk.bf16.gmra.mxu1 %vm668_vm4, %v3196_v33  ;;  %v3573_v56 = vadd.f32 %v1610_v12, %v1503_v51 }
 0x1a8   : > { %v1372_v61 = vadd.f32 %v1326_v38, %v1008_v27  ;;  %v3906_v27 = vld [vmem:[#allocation14_spill] sm:$0xff] }
 0x1ab   : > { %v1612_v41 = vpop.f32.mrf.mxu0 }
 0x1ac   : > { %v1458_v9 = vpop.f32.mrf.mxu3  ;;  %2578 = vmatmul.msk.bf16.gmra.mxu2 %vm668_vm4, %v3899_v43  ;;  %v1012_v37 = vpop.f32.mrf.mxu1  ;;  %v3907_v43 = vld [vmem:[#allocation24_spill] sm:$0xff] }
 0x1ad   : > { %v1504_v58 = vadd.f32 %v1458_v9, %v1372_v61  ;;  %v1013_v8 = vadd.f32 %v1012_v37, %v3903_v6  ;;  %v3908_v37 = vld [vmem:[#allocation20_spill] sm:$0xff] }
 0x1af   : > { %v1329_v31 = vpop.f32.mrf.mxu2  ;;  %v3578_v0 = vadd.f32 %v1612_v41, %v1504_v58 }
 0x1b0   : > { %v1373_v44 = vadd.f32 %v1329_v31, %v1011_v20 }
 0x1b1   : > { %2594 = vmatmul.msk.bf16.gmra.mxu3 %vm668_vm4, %v3901_v55 }
 0x1b3   : > { %v1615_v33 = vpop.f32.mrf.mxu0 }
 0x1b4   : > { %v1461_v3 = vpop.f32.mrf.mxu3  ;;  %v1015_v40 = vpop.f32.mrf.mxu1 }
 0x1b5   : > { %v1505_v48 = vadd.f32 %v1461_v3, %v1373_v44  ;;  %v1016_v12 = vadd.f32 %v1015_v40, %v3905_v1  ;;  %v3913_v1 = vld [vmem:[#allocation25_spill] sm:$0xff] }
 0x1b6   : > { %2611 = vmatmul.msk.bf16.gmra.mxu0 %vm668_vm4, %v3902_v2 }
 0x1b7   : > { %v1331_v39 = vpop.f32.mrf.mxu2  ;;  %2559 = vmatmul.msk.bf16.gmra.mxu1 %vm668_vm4, %v3902_v2  ;;  %v3587_v29 = vadd.f32 %v1615_v33, %v1505_v48  ;;  %v3909_v33 = vld [vmem:[#allocation26_spill] sm:$0xff]  ;;  %v3910_v48 = vld [vmem:[#allocation23_spill] sm:$0xff] }
 0x1b8   : > { %v1374_v5 = vadd.f32 %v1331_v39, %v1013_v8 }
 0x1bb   : > { %v1617_v34 = vpop.f32.mrf.mxu0 }
 0x1bc   : > { %v1463_v62 = vpop.f32.mrf.mxu3  ;;  %2579 = vmatmul.msk.bf16.gmra.mxu2 %vm668_vm4, %v3904_v45  ;;  %v1017_v18 = vpop.f32.mrf.mxu1 }
 0x1bd   : > { %v1506_v24 = vadd.f32 %v1463_v62, %v1374_v5  ;;  %v1018_v58 = vadd.f32 %v1017_v18, %v3908_v37  ;;  %v3911_v5 = vld [vmem:[#allocation2_spill] sm:$0xff] }
 0x1bf   : > { %v1334_v57 = vpop.f32.mrf.mxu2  ;;  %v3592_v52 = vadd.f32 %v1617_v34, %v1506_v24  ;;  %v3912_v24 = vld [vmem:[#allocation28_spill] sm:$0xff] }
 0x1c0   : > { %v1375_v51 = vadd.f32 %v1334_v57, %v1016_v12 }
 0x1c1   : > { %2595 = vmatmul.msk.bf16.gmra.mxu3 %vm668_vm4, %v3906_v27 }
 0x1c3   : > { %v1620_v38 = vpop.f32.mrf.mxu0 }
 0x1c4   : > { %v1466_v61 = vpop.f32.mrf.mxu3  ;;  %v1020_v41 = vpop.f32.mrf.mxu1 }
 0x1c5   : > { %v1507_v9 = vadd.f32 %v1466_v61, %v1375_v51  ;;  %v1021_v2 = vadd.f32 %v1020_v41, %v3910_v48 }
 0x1c6   : > { %2612 = vmatmul.msk.bf16.gmra.mxu0 %vm668_vm4, %v3907_v43 }
 0x1c7   : > { %v1336_v63 = vpop.f32.mrf.mxu2  ;;  %2560 = vmatmul.msk.bf16.gmra.mxu1 %vm668_vm4, %v3907_v43  ;;  %v3601_v20 = vadd.f32 %v1620_v38, %v1507_v9  ;;  %v3914_v43 = vld [vmem:[#allocation27_spill] sm:$0xff] }
 0x1c8   : > { %v1376_v31 = vadd.f32 %v1336_v63, %v1018_v58 }
 0x1cb   : > { %v1622_v44 = vpop.f32.mrf.mxu0 }
 0x1cc   : > { %v1468_v55 = vpop.f32.mrf.mxu3  ;;  %2580 = vmatmul.msk.bf16.gmra.mxu2 %vm668_vm4, %v3909_v33  ;;  %v1022_v3 = vpop.f32.mrf.mxu1 }
 0x1cd   : > { %v1508_v40 = vadd.f32 %v1468_v55, %v1376_v31  ;;  %v1023_v12 = vadd.f32 %v1022_v3, %v3913_v1 }
 0x1cf   : > { %v1339_v6 = vpop.f32.mrf.mxu2  ;;  %v3606_v8 = vadd.f32 %v1622_v44, %v1508_v40 }
 0x1d0   : > { %v1377_v39 = vadd.f32 %v1339_v6, %v1021_v2 }
 0x1d1   : > { %2596 = vmatmul.msk.bf16.gmra.mxu3 %vm668_vm4, %v3911_v5 }
 0x1d3   : > { %v1625_v34 = vpop.f32.mrf.mxu0 }
 0x1d4   : > { %v1471_v62 = vpop.f32.mrf.mxu3  ;;  %v1025_v45 = vpop.f32.mrf.mxu1 }
 0x1d5   : > { %v1509_v18 = vadd.f32 %v1471_v62, %v1377_v39  ;;  %v1026_v37 = vadd.f32 %v1025_v45, %v3914_v43  ;;  %v3916_v43 = vld [vmem:[#allocation9_spill] sm:$0xff] }
 0x1d6   : > { %2613 = vmatmul.msk.bf16.gmra.mxu0 %vm668_vm4, %v3912_v24 }
 0x1d7   : > { %v1341_v57 = vpop.f32.mrf.mxu2  ;;  %2561 = vmatmul.msk.bf16.gmra.mxu1 %vm668_vm4, %v3912_v24  ;;  %v3615_v51 = vadd.f32 %v1625_v34, %v1509_v18 }
 0x1d8   : > { %v1378_v27 = vadd.f32 %v1341_v57, %v1023_v12 }
 0x1db   : > { %v1627_v38 = vpop.f32.mrf.mxu0 }
 0x1dc   : > { %v1473_v61 = vpop.f32.mrf.mxu3  ;;  %2581 = vmatmul.msk.bf16.gmra.mxu2 %vm668_vm4, %v3308_v19  ;;  %v1027_v41 = vpop.f32.mrf.mxu1  ;;  %v3915_v19 = vld [vmem:[#allocation29_spill] sm:$0xff] }
 0x1dd   : > { %v1510_v9 = vadd.f32 %v1473_v61, %v1378_v27  ;;  %v1028_v48 = vadd.f32 %v1027_v41, %v3915_v19  ;;  %v3647_v61 = vld [vmem:[%s3797_s2] ss:$0 sm:$0xff] }
 0x1df   : > { %v1344_v58 = vpop.f32.mrf.mxu2  ;;  %v3620_v63 = vadd.f32 %v1627_v38, %v1510_v9 }
 0x1e0   : > { %v1379_v31 = vadd.f32 %v1344_v58, %v1026_v37 }
 0x1e1   : > { %2597 = vmatmul.msk.bf16.gmra.mxu3 %vm668_vm4, %v2864_v4 }
 0x1e3   : > { %v1630_v44 = vpop.f32.mrf.mxu0 }
 0x1e4   : > { %v1476_v55 = vpop.f32.mrf.mxu3  ;;  %v1693_v33 = vpop.f32.mrf.mxu1 }
 0x1e5   : > { %v1511_v3 = vadd.f32 %v1476_v55, %v1379_v31  ;;  %v1773_v40 = vadd.f32 %v1693_v33, %v3323_v32  ;;  %v3917_v33 = vld [vmem:[#allocation15_spill] sm:$0xff] }
 0x1e6   : > { %2614 = vmatmul.msk.bf16.gmra.mxu0 %vm668_vm4, %v3325_v10 }
 0x1e7   : > { %v1346_v2 = vpop.f32.mrf.mxu2  ;;  %2562 = vmatmul.msk.bf16.gmra.mxu1 %vm668_vm4, %v3325_v10  ;;  %v3630_v6 = vadd.f32 %v1630_v44, %v1511_v3 }
 0x1e8   : > { %v1380_v39 = vadd.f32 %v1346_v2, %v1028_v48 }
 0x1eb   : > { %v1632_v5 = vpop.f32.mrf.mxu0 }
 0x1ec   : > { %v1478_v4 = vpop.f32.mrf.mxu3  ;;  %2582 = vmatmul.msk.bf16.gmra.mxu2 %vm668_vm4, %v3332_v42  ;;  %v1695_v34 = vpop.f32.mrf.mxu1 }
 0x1ed   : > { %v1512_v62 = vadd.f32 %v1478_v4, %v1380_v39  ;;  %v1774_v32 = vadd.f32 %v1695_v34, %v3336_v35  ;;  %v3919_v34 = vld [vmem:[#allocation31_spill] sm:$0xff] }
 0x1ef   : > { %v1825_v45 = vpop.f32.mrf.mxu2  ;;  %v3635_v18 = vadd.f32 %v1632_v5, %v1512_v62  ;;  %v3918_v5 = vld [vmem:[#allocation30_spill] sm:$0xff] }
 0x1f0   : > { %v1905_v24 = vadd.f32 %v1825_v45, %v1773_v40 }
 0x1f1   : > { %2598 = vmatmul.msk.bf16.gmra.mxu3 %vm668_vm4, %v2949_v25 }
 0x1f3   : > { %v2117_v10 = vpop.f32.mrf.mxu0 }
 0x1f4   : > { %v1979_v1 = vpop.f32.mrf.mxu3  ;;  %v1698_v12 = vpop.f32.mrf.mxu1 }
 0x1f5   : > { %v2059_v57 = vadd.f32 %v1979_v1, %v1905_v24  ;;  %v1775_v27 = vadd.f32 %v1698_v12, %v3349_v21 }
 0x1f6   : > { %2615 = vmatmul.msk.bf16.gmra.mxu0 %vm668_vm4, %v3351_v13 }
 0x1f7   : > { %v2197_v42 = vadd.f32 %v2117_v10, %v2059_v57  ;;  %v1827_v38 = vpop.f32.mrf.mxu2  ;;  %2563 = vmatmul.msk.bf16.gmra.mxu1 %vm668_vm4, %v3351_v13  ;;  %v3920_v57 = vld [vmem:[#allocation32_spill] sm:$0xff] }
 0x1f8   : > { %v1906_v35 = vadd.f32 %v1827_v38, %v1774_v32 }
 0x1f9   : > { %v2233_v58 = vadd.f32 %v3647_v61, %v2197_v42 }
 0x1fb   : > { %v2119_v25 = vpop.f32.mrf.mxu0  ;;  %v2265_v3 = vmax.f32 %v2233_v58, 0.0  ;;  %v3922_v58 = vld [vmem:[#allocation3_spill] sm:$0xff] }
 0x1fc   : > { %v1981_v41 = vpop.f32.mrf.mxu3  ;;  %2583 = vmatmul.msk.bf16.gmra.mxu2 %vm668_vm4, %v3358_v50  ;;  %v1700_v21 = vpop.f32.mrf.mxu1 }
 0x1fd   : > { %v2060_v9 = vadd.f32 %v1981_v41, %v1906_v35  ;;  %v1776_v37 = vadd.f32 %v1700_v21, %v3916_v43  ;;  %v3921_v35 = vld [vmem:[#allocation33_spill] sm:$0xff] }
 0x1ff   : > { %v2198_v31 = vadd.f32 %v2119_v25, %v2060_v9  ;;  %v1830_v44 = vpop.f32.mrf.mxu2 }
 0x200   : > { %v1907_v13 = vadd.f32 %v1830_v44, %v1775_v27 }
 0x201   : > { %v2234_v55 = vadd.f32 %v3647_v61, %v2198_v31  ;;  %2599 = vmatmul.msk.bf16.gmra.mxu3 %vm668_vm4, %v3917_v33 }
 0x203   : > { %v2266_v40 = vmax.f32 %v2234_v55, 0.0  ;;  %v2122_v19 = vpop.f32.mrf.mxu0 }
 0x204   : > { %v1984_v48 = vpop.f32.mrf.mxu3  ;;  %v1703_v2 = vpop.f32.mrf.mxu1 }
 0x205   : > { %v2297_v50 = vadd.f32 %v2266_v40, %v2265_v3  ;;  %v2061_v39 = vadd.f32 %v1984_v48, %v1907_v13  ;;  %v1777_v4 = vadd.f32 %v1703_v2, %v3918_v5  ;;  %v3923_v3 = vld [vmem:[#allocation34_spill] sm:$0xff] }
 0x206   : > { %2616 = vmatmul.msk.bf16.gmra.mxu0 %vm668_vm4, %v3919_v34 }
 0x207   : > { %v2199_v62 = vadd.f32 %v2122_v19, %v2061_v39  ;;  %v1832_v32 = vpop.f32.mrf.mxu2  ;;  %2564 = vmatmul.msk.bf16.gmra.mxu1 %vm668_vm4, %v3919_v34  ;;  %v3924_v19 = vld [vmem:[#allocation35_spill] sm:$0xff] }
 0x208   : > { %v1908_v45 = vadd.f32 %v1832_v32, %v1776_v37 }
 0x209   : > { %v2235_v24 = vadd.f32 %v3647_v61, %v2199_v62  ;;  %v3925_v62 = vld [vmem:[#allocation36_spill] sm:$0xff] }
 0x20b   : > { %v2267_v10 = vmax.f32 %v2235_v24, 0.0  ;;  %v2124_v1 = vpop.f32.mrf.mxu0 }
 0x20c   : > { %v1986_v12 = vpop.f32.mrf.mxu3  ;;  %2584 = vmatmul.msk.bf16.gmra.mxu2 %vm668_vm4, %v3920_v57  ;;  %v1705_v27 = vpop.f32.mrf.mxu1 }
 0x20d   : > { %v2298_v42 = vadd.f32 %v2297_v50, %v2267_v10  ;;  %v2062_v38 = vadd.f32 %v1986_v12, %v1908_v45  ;;  %v1778_v25 = vadd.f32 %v1705_v27, %v3921_v35  ;;  %v3926_v10 = vld [vmem:[#allocation37_spill] sm:$0xff] }
 0x20f   : > { %v2200_v41 = vadd.f32 %v2124_v1, %v2062_v38  ;;  %v1835_v21 = vpop.f32.mrf.mxu2  ;;  %v3927_v38 = vld [vmem:[#allocation4_spill] sm:$0xff] }
 0x210   : > { %v1909_v9 = vadd.f32 %v1835_v21, %v1777_v4 }
 0x211   : > { %v2236_v43 = vadd.f32 %v3647_v61, %v2200_v41  ;;  %2600 = vmatmul.msk.bf16.gmra.mxu3 %vm668_vm4, %v3922_v58  ;;  %v3928_v58 = vld [vmem:[#allocation38_spill] sm:$0xff] }
 0x213   : > { %v2268_v37 = vmax.f32 %v2236_v43, 0.0  ;;  %v2127_v31 = vpop.f32.mrf.mxu0 }
 0x214   : > { %v1989_v44 = vpop.f32.mrf.mxu3  ;;  %v1708_v13 = vpop.f32.mrf.mxu1 }
 0x215   : > { %v2299_v55 = vadd.f32 %v2298_v42, %v2268_v37  ;;  %v2063_v33 = vadd.f32 %v1989_v44, %v1909_v9  ;;  %v1779_v40 = vadd.f32 %v1708_v13, %v3923_v3 }
 0x216   : > { %2617 = vmatmul.msk.bf16.gmra.mxu0 %vm668_vm4, %v3924_v19 }
 0x217   : > { %v2201_v48 = vadd.f32 %v2127_v31, %v2063_v33  ;;  %v1837_v2 = vpop.f32.mrf.mxu2  ;;  %2565 = vmatmul.msk.bf16.gmra.mxu1 %vm668_vm4, %v3924_v19  ;;  %v3929_v31 = vld [vmem:[#allocation39_spill] sm:$0xff] }
 0x218   : > { %v1910_v50 = vadd.f32 %v1837_v2, %v1778_v25 }
 0x219   : > { %v2237_v39 = vadd.f32 %v3647_v61, %v2201_v48  ;;  %v3930_v48 = vld [vmem:[#allocation6_spill] sm:$0xff] }
 0x21b   : > { %v2269_v5 = vmax.f32 %v2237_v39, 0.0  ;;  %v2129_v4 = vpop.f32.mrf.mxu0 }
 0x21c   : > { %v1991_v34 = vpop.f32.mrf.mxu3  ;;  %2585 = vmatmul.msk.bf16.gmra.mxu2 %vm668_vm4, %v3925_v62  ;;  %v1710_v32 = vpop.f32.mrf.mxu1 }
 0x21d   : > { %v2300_v45 = vadd.f32 %v2299_v55, %v2269_v5  ;;  %v2064_v24 = vadd.f32 %v1991_v34, %v1910_v50  ;;  %v1780_v1 = vadd.f32 %v1710_v32, %v3926_v10  ;;  %v3931_v5 = vld [vmem:[#allocation7_spill] sm:$0xff] }
 0x21f   : > { %v2202_v12 = vadd.f32 %v2129_v4, %v2064_v24  ;;  %v1840_v57 = vpop.f32.mrf.mxu2  ;;  %v3932_v24 = vld [vmem:[#allocation10_spill] sm:$0xff] }
 0x220   : > { %v1911_v27 = vadd.f32 %v1840_v57, %v1779_v40 }
 0x221   : > { %v2238_v42 = vadd.f32 %v3647_v61, %v2202_v12  ;;  %2601 = vmatmul.msk.bf16.gmra.mxu3 %vm668_vm4, %v3927_v38  ;;  %v3933_v38 = vld [vmem:[#allocation40_spill] sm:$0xff] }
 0x223   : > { %v2270_v35 = vmax.f32 %v2238_v42, 0.0  ;;  %v2132_v25 = vpop.f32.mrf.mxu0 }
 0x224   : > { %v1994_v41 = vpop.f32.mrf.mxu3  ;;  %v1713_v21 = vpop.f32.mrf.mxu1 }
 0x225   : > { %v2301_v9 = vadd.f32 %v2300_v45, %v2270_v35  ;;  %v2065_v43 = vadd.f32 %v1994_v41, %v1911_v27  ;;  %v1781_v37 = vadd.f32 %v1713_v21, %v3928_v58 }
 0x226   : > { %2618 = vmatmul.msk.bf16.gmra.mxu0 %vm668_vm4, %v3929_v31 }
 0x227   : > { %v2203_v44 = vadd.f32 %v2132_v25, %v2065_v43  ;;  %v1842_v13 = vpop.f32.mrf.mxu2  ;;  %2566 = vmatmul.msk.bf16.gmra.mxu1 %vm668_vm4, %v3929_v31  ;;  %v3934_v25 = vld [vmem:[#allocation41_spill] sm:$0xff] }
 0x228   : > { %v1912_v55 = vadd.f32 %v1842_v13, %v1780_v1 }
 0x229   : > { %v2239_v33 = vadd.f32 %v3647_v61, %v2203_v44 }
 0x22b   : > { %v2271_v3 = vmax.f32 %v2239_v33, 0.0  ;;  %v2134_v40 = vpop.f32.mrf.mxu0 }
 0x22c   : > { %v1996_v19 = vpop.f32.mrf.mxu3  ;;  %2586 = vmatmul.msk.bf16.gmra.mxu2 %vm668_vm4, %v3930_v48  ;;  %v1715_v2 = vpop.f32.mrf.mxu1 }
 0x22d   : > { %v2302_v50 = vadd.f32 %v2301_v9, %v2271_v3  ;;  %v2066_v39 = vadd.f32 %v1996_v19, %v1912_v55  ;;  %v1782_v4 = vadd.f32 %v1715_v2, %v3931_v5 }
 0x22f   : > { %v2204_v34 = vadd.f32 %v2134_v40, %v2066_v39  ;;  %v1845_v62 = vpop.f32.mrf.mxu2  ;;  %v3935_v39 = vld [vmem:[#allocation42_spill] sm:$0xff] }
 0x230   : > { %v1913_v32 = vadd.f32 %v1845_v62, %v1781_v37  ;;  %v1670_v5 = vrot.slane %v3935_v39, 5 }
 0x231   : > { %v2240_v45 = vadd.f32 %v3647_v61, %v2204_v34  ;;  %2602 = vmatmul.msk.bf16.gmra.mxu3 %vm668_vm4, %v3932_v24  ;;  %v3936_v24 = vld [vmem:[#allocation5_spill] sm:$0xff] }
 0x233   : > { %v2272_v10 = vmax.f32 %v2240_v45, 0.0  ;;  %v2137_v1 = vpop.f32.mrf.mxu0 }
 0x234   : > { %v1999_v12 = vpop.f32.mrf.mxu3  ;;  %v1718_v57 = vpop.f32.mrf.mxu1 }
 0x235   : > { %v2303_v27 = vadd.f32 %v2302_v50, %v2272_v10  ;;  %v2067_v42 = vadd.f32 %v1999_v12, %v1913_v32  ;;  %v1783_v35 = vadd.f32 %v1718_v57, %v3933_v38  ;;  %v2553_v10 = vrot.slane %v3936_v24, 9 }
 0x236   : > { %2619 = vmatmul.msk.bf16.gmra.mxu0 %vm668_vm4, %v3934_v25  ;;  %v1673_v38 = vrot.slane %v3478_v11, 5 }
 0x237   : > { %v2205_v41 = vadd.f32 %v2137_v1, %v2067_v42  ;;  %v1847_v21 = vpop.f32.mrf.mxu2  ;;  %2567 = vmatmul.msk.bf16.gmra.mxu1 %vm668_vm4, %v3934_v25 }
 0x238   : > { %v1914_v9 = vadd.f32 %v1847_v21, %v1782_v4  ;;  %v3706_v4 = vld [vmem:[%s2726_s27 + $0xcc] sm:$0xf] }
 0x239   : > { %v2241_v43 = vadd.f32 %v3647_v61, %v2205_v41  ;;  %v1941_v1 = vshll.u32 %v3706_v4, 16  ;;  %v1671_v41 = vsel %vm3056_vm7, %v2553_v10, %v1670_v5 }
 0x23b   : > { %v2273_v58 = vmax.f32 %v2241_v43, 0.0  ;;  %v2139_v37 = vpop.f32.mrf.mxu0 }
 0x23c   : > { %v2001_v31 = vpop.f32.mrf.mxu3  ;;  %2587 = vmatmul.msk.bf16.gmra.mxu2 %vm668_vm4, %v3471_v30  ;;  %v1720_v44 = vpop.f32.mrf.mxu1  ;;  %v3709_v30 = vld [vmem:[%s2726_s27 + $0xd0] sm:$0xf] }
 0x23d   : > { %v2304_v13 = vadd.f32 %v2303_v27, %v2273_v58  ;;  %v2068_v55 = vadd.f32 %v2001_v31, %v1914_v9  ;;  %v1784_v33 = vadd.f32 %v1720_v44, %v3475_v47  ;;  %v1947_v12 = vshll.u32 %v3709_v30, 16 }
 0x23e   : > { %v1951_v57 = vshrl.u32 %v3709_v30, 16  ;;  %v1943_v9 = vrot.slane %v1941_v1, 5 }
 0x23f   : > { %v2206_v3 = vadd.f32 %v2139_v37, %v2068_v55  ;;  %v1850_v40 = vpop.f32.mrf.mxu2  ;;  %v1949_v43 = vrot.slane %v1947_v12, 5 }
 0x240   : > { %v1915_v19 = vadd.f32 %v1850_v40, %v1783_v35  ;;  %v1953_v58 = vrot.slane %v1951_v57, 4 }
 0x241   : > { %v2242_v48 = vadd.f32 %v3647_v61, %v2206_v3  ;;  %2603 = vmatmul.msk.bf16.gmra.mxu3 %vm668_vm4, %v3065_v53  ;;  %v1938_v53 = vshrl.u32 %v3706_v4, 16  ;;  %v1675_v3 = vunpack.c.l.b16 %v1671_v41 }
 0x243   : > { %v2274_v2 = vmax.f32 %v2242_v48, 0.0  ;;  %v2142_v50 = vpop.f32.mrf.mxu0  ;;  %v1940_v21 = vrot.slane %v1938_v53, 4 }
 0x244   : > { %v2004_v34 = vpop.f32.mrf.mxu3  ;;  %v1723_v62 = vpop.f32.mrf.mxu1 }
 0x245   : > { %v2305_v32 = vadd.f32 %v2304_v13, %v2274_v2  ;;  %v2069_v47 = vadd.f32 %v2004_v34, %v1915_v19  ;;  %v1785_v45 = vadd.f32 %v1723_v62, %v3492_v15  ;;  %v1672_v15 = vrot.slane %v1670_v5, 4  ;;  %v223_v13 = vld [vmem:[%s2726_s27 + $0xd4] sm:$0x1] }
 0x246   : > { %2620 = vmatmul.msk.bf16.gmra.mxu0 %vm668_vm4, %v3494_v46  ;;  %v1944_v48 = vor.u32 %v1943_v9, %v1940_v21  ;;  %v1954_v2 = vor.u32 %v1953_v58, %v1949_v43  ;;  %v2642_v21 = vld [vmem:[%s2726_s27 + $0xcc] sm:$0xff] }
 0x247   : > { %v2207_v27 = vadd.f32 %v2142_v50, %v2069_v47  ;;  %v1852_v42 = vpop.f32.mrf.mxu2  ;;  %2568 = vmatmul.msk.bf16.gmra.mxu1 %vm668_vm4, %v3494_v46  ;;  %v1674_v44 = vsel %vm3056_vm7, %v1672_v15, %v1673_v38  ;;  %v1957_v50 = vshll.u32 %v223_v13, 16 }
 0x248   : > { %v1916_v35 = vadd.f32 %v1852_v42, %v1784_v33  ;;  %v1676_v19 = vunpack.c.l.b16 %v1674_v44  ;;  %v1955_v24 = vrot.slane %v1954_v2, 4 }
 0x249   : > { %v2243_v25 = vadd.f32 %v3647_v61, %v2207_v27 }
 0x24a   : > { %v1677_v47 = vpack.c.b16 %v1676_v19, %v1675_v3 }
 0x24b   : > { %v2275_v37 = vmax.f32 %v2243_v25, 0.0  ;;  %v2144_v31 = vpop.f32.mrf.mxu0  ;;  %v2097_v25 = vrot.slane %v223_v13, 5 }
 0x24c   : > { %v2006_v46 = vpop.f32.mrf.mxu3  ;;  %2588 = vmatmul.msk.bf16.gmra.mxu2 %vm668_vm4, %v3503_v54  ;;  %v1725_v11 = vpop.f32.mrf.mxu1  ;;  %v1945_v54 = vrot.slane %v1944_v48, 4 }
 0x24d   : > { %v2306_v55 = vadd.f32 %v2305_v32, %v2275_v37  ;;  %v2070_v33 = vadd.f32 %v2006_v46, %v1916_v35  ;;  %v1786_v40 = vadd.f32 %v1725_v11, %v3506_v28  ;;  %v1959_v32 = vrot.slane %v1957_v50, 5 }
 0x24e   : > { %v2094_v28 = vrot.slane %v3709_v30, 5  ;;  %v2606_v30 = vrot.slane %v3706_v4, 9 }
 0x24f   : > { %v2208_v39 = vadd.f32 %v2144_v31, %v2070_v33  ;;  %v1855_v5 = vpop.f32.mrf.mxu2  ;;  %v1960_v42 = vsel %vm2753_vm3, %v1955_v24, %v1959_v32 }
 0x250   : > { %v1917_v34 = vadd.f32 %v1855_v5, %v1785_v45  ;;  %v2096_v35 = vrot.slane %v2094_v28, 4  ;;  %v1962_v58 = vunpack.c.l.b16 %v1960_v42  ;;  %v2095_v36 = vsel %vm3056_vm7, %v2606_v30, %v2094_v28 }
 0x251   : > { %v2244_v62 = vadd.f32 %v3647_v61, %v2208_v39  ;;  %2604 = vmatmul.msk.bf16.gmra.mxu3 %vm668_vm4, %v3510_v22  ;;  %v1950_v22 = vsel %vm2753_vm3, %v1945_v54, %v1949_v43  ;;  %v2099_v33 = vunpack.c.l.b16 %v2095_v36 }
 0x252   : > { %v1961_v9 = vunpack.c.l.b16 %v1950_v22  ;;  %v2098_v43 = vsel %vm3056_vm7, %v2096_v35, %v2097_v25 }
 0x253   : > { %v2276_v10 = vmax.f32 %v2244_v62, 0.0  ;;  %v2147_v53 = vpop.f32.mrf.mxu0  ;;  %v2100_v3 = vunpack.c.l.b16 %v2098_v43 }
 0x254   : > { %v2009_v1 = vpop.f32.mrf.mxu3  ;;  %v1728_v12 = vpop.f32.mrf.mxu1  ;;  %v1963_v11 = vpack.c.b16 %v1962_v58, %v1961_v9 }
 0x255   : > { %v2307_v57 = vadd.f32 %v2306_v55, %v2276_v10  ;;  %v2071_v27 = vadd.f32 %v2009_v1, %v1917_v34  ;;  %v1787_v45 = vadd.f32 %v1728_v12, %v3517_v17  ;;  %v2101_v14 = vpack.c.b16 %v2100_v3, %v2099_v33 }
 0x256   : > { %2621 = vmatmul.msk.bf16.gmra.mxu0 %vm668_vm4, %v1677_v47 }
 0x257   : > { %v2209_v15 = vadd.f32 %v2147_v53, %v2071_v27  ;;  %v1857_v38 = vpop.f32.mrf.mxu2  ;;  %2569 = vmatmul.msk.bf16.gmra.mxu1 %vm668_vm4, %v1677_v47 }
 0x258   : > { %v1918_v41 = vadd.f32 %v1857_v38, %v1786_v40 }
 0x259   : > { %v2245_v17 = vadd.f32 %v3647_v61, %v2209_v15 }
 0x25b   : > { %v2277_v37 = vmax.f32 %v2245_v17, 0.0  ;;  %v2149_v31 = vpop.f32.mrf.mxu0 }
 0x25c   : > { %v2011_v44 = vpop.f32.mrf.mxu3  ;;  %2589 = vmatmul.msk.bf16.gmra.mxu2 %vm668_vm4, %v2642_v21  ;;  %v1730_v4 = vpop.f32.mrf.mxu1 }
 0x25d   : > { %v2308_v46 = vadd.f32 %v2307_v57, %v2277_v37  ;;  %v2072_v13 = vadd.f32 %v2011_v44, %v1918_v41  ;;  %v1788_v55 = vadd.f32 %v1730_v4, %v3522_v7 }
 0x25f   : > { %v2210_v40 = vadd.f32 %v2149_v31, %v2072_v13  ;;  %v1860_v19 = vpop.f32.mrf.mxu2 }
 0x260   : > { %v1919_v48 = vadd.f32 %v1860_v19, %v1787_v45 }
 0x261   : > { %v2246_v2 = vadd.f32 %v3647_v61, %v2210_v40  ;;  %2605 = vmatmul.msk.bf16.gmra.mxu3 %vm668_vm4, %v1963_v11 }
 0x263   : > { %v2278_v50 = vmax.f32 %v2246_v2, 0.0  ;;  %v2152_v39 = vpop.f32.mrf.mxu0 }
 0x264   : > { %v2014_v5 = vpop.f32.mrf.mxu3  ;;  %v1733_v34 = vpop.f32.mrf.mxu1 }
 0x265   : > { %v2309_v62 = vadd.f32 %v2308_v46, %v2278_v50  ;;  %v2073_v47 = vadd.f32 %v2014_v5, %v1919_v48  ;;  %v1789_v54 = vadd.f32 %v1733_v34, %v3531_v16 }
 0x266   : > { %2622 = vmatmul.msk.bf16.gmra.mxu0 %vm668_vm4, %v2101_v14 }
 0x267   : > { %v2211_v7 = vadd.f32 %v2152_v39, %v2073_v47  ;;  %v1862_v24 = vpop.f32.mrf.mxu2 }
 0x268   : > { %v1920_v32 = vadd.f32 %v1862_v24, %v1788_v55 }
 0x269   : > { %v2247_v10 = vadd.f32 %v3647_v61, %v2211_v7 }
 0x26b   : > { %v2279_v53 = vmax.f32 %v2247_v10, 0.0  ;;  %v2154_v28 = vpop.f32.mrf.mxu0 }
 0x26c   : > { %v2016_v1 = vpop.f32.mrf.mxu3  ;;  %v1735_v12 = vpop.f32.mrf.mxu1 }
 0x26d   : > { %v2310_v57 = vadd.f32 %v2309_v62, %v2279_v53  ;;  %v2074_v27 = vadd.f32 %v2016_v1, %v1920_v32  ;;  %v1790_v45 = vadd.f32 %v1735_v12, %v3536_v26 }
 0x26f   : > { %v2212_v22 = vadd.f32 %v2154_v28, %v2074_v27  ;;  %v1865_v42 = vpop.f32.mrf.mxu2 }
 0x270   : > { %v1921_v15 = vadd.f32 %v1865_v42, %v1789_v54 }
 0x271   : > { %v2248_v16 = vadd.f32 %v3647_v61, %v2212_v22 }
 0x273   : > { %v2280_v38 = vmax.f32 %v2248_v16, 0.0  ;;  %v2157_v30 = vpop.f32.mrf.mxu0 }
 0x274   : > { %v2019_v35 = vpop.f32.mrf.mxu3  ;;  %v1738_v25 = vpop.f32.mrf.mxu1 }
 0x275   : > { %v2311_v41 = vadd.f32 %v2310_v57, %v2280_v38  ;;  %v2075_v21 = vadd.f32 %v2019_v35, %v1921_v15  ;;  %v1791_v17 = vadd.f32 %v1738_v25, %v3545_v59 }
 0x277   : > { %v2213_v9 = vadd.f32 %v2157_v30, %v2075_v21  ;;  %v1867_v58 = vpop.f32.mrf.mxu2 }
 0x278   : > { %v1922_v37 = vadd.f32 %v1867_v58, %v1790_v45 }
 0x279   : > { %v2249_v31 = vadd.f32 %v3647_v61, %v2213_v9 }
 0x27b   : > { %v2281_v36 = vmax.f32 %v2249_v31, 0.0  ;;  %v2159_v26 = vpop.f32.mrf.mxu0 }
 0x27c   : > { %v2021_v43 = vpop.f32.mrf.mxu3  ;;  %v1740_v44 = vpop.f32.mrf.mxu1 }
 0x27d   : > { %v2312_v4 = vadd.f32 %v2311_v41, %v2281_v36  ;;  %v2076_v46 = vadd.f32 %v2021_v43, %v1922_v37  ;;  %v1792_v13 = vadd.f32 %v1740_v44, %v3550_v49 }
 0x27f   : > { %v2214_v11 = vadd.f32 %v2159_v26, %v2076_v46  ;;  %v1870_v55 = vpop.f32.mrf.mxu2 }
 0x280   : > { %v1923_v33 = vadd.f32 %v1870_v55, %v1791_v17 }
 0x281   : > { %v2250_v3 = vadd.f32 %v3647_v61, %v2214_v11 }
 0x283   : > { %v2282_v40 = vmax.f32 %v2250_v3, 0.0  ;;  %v2162_v59 = vpop.f32.mrf.mxu0 }
 0x284   : > { %v2024_v19 = vpop.f32.mrf.mxu3  ;;  %v1743_v48 = vpop.f32.mrf.mxu1 }
 0x285   : > { %v2313_v2 = vadd.f32 %v2312_v4, %v2282_v40  ;;  %v2077_v14 = vadd.f32 %v2024_v19, %v1923_v33  ;;  %v1793_v50 = vadd.f32 %v1743_v48, %v3559_v23 }
 0x287   : > { %v2215_v39 = vadd.f32 %v2162_v59, %v2077_v14  ;;  %v1872_v5 = vpop.f32.mrf.mxu2 }
 0x288   : > { %v1924_v34 = vadd.f32 %v1872_v5, %v1792_v13 }
 0x289   : > { %v2251_v62 = vadd.f32 %v3647_v61, %v2215_v39 }
 0x28b   : > { %v2283_v47 = vmax.f32 %v2251_v62, 0.0  ;;  %v2164_v49 = vpop.f32.mrf.mxu0 }
 0x28c   : > { %v2026_v54 = vpop.f32.mrf.mxu3  ;;  %v1745_v7 = vpop.f32.mrf.mxu1 }
 0x28d   : > { %v2314_v24 = vadd.f32 %v2313_v2, %v2283_v47  ;;  %v2078_v32 = vadd.f32 %v2026_v54, %v1924_v34  ;;  %v1794_v15 = vadd.f32 %v1745_v7, %v3564_v60 }
 0x28f   : > { %v2216_v10 = vadd.f32 %v2164_v49, %v2078_v32  ;;  %v1875_v53 = vpop.f32.mrf.mxu2 }
 0x290   : > { %v1925_v28 = vadd.f32 %v1875_v53, %v1793_v50 }
 0x291   : > { %v2252_v1 = vadd.f32 %v3647_v61, %v2216_v10 }
 0x293   : > { %v2284_v12 = vmax.f32 %v2252_v1, 0.0  ;;  %v2167_v57 = vpop.f32.mrf.mxu0 }
 0x294   : > { %v2029_v27 = vpop.f32.mrf.mxu3  ;;  %v1748_v23 = vpop.f32.mrf.mxu1 }
 0x295   : > { %v2315_v45 = vadd.f32 %v2314_v24, %v2284_v12  ;;  %v2079_v22 = vadd.f32 %v2029_v27, %v1925_v28  ;;  %v1795_v37 = vadd.f32 %v1748_v23, %v3573_v56 }
 0x297   : > { %v2217_v42 = vadd.f32 %v2167_v57, %v2079_v22  ;;  %v1877_v16 = vpop.f32.mrf.mxu2 }
 0x298   : > { %v1926_v30 = vadd.f32 %v1877_v16, %v1794_v15 }
 0x299   : > { %v2253_v38 = vadd.f32 %v3647_v61, %v2217_v42 }
 0x29b   : > { %v2285_v35 = vmax.f32 %v2253_v38, 0.0  ;;  %v2169_v25 = vpop.f32.mrf.mxu0 }
 0x29c   : > { %v2031_v41 = vpop.f32.mrf.mxu3  ;;  %v1750_v21 = vpop.f32.mrf.mxu1 }
 0x29d   : > { %v2316_v17 = vadd.f32 %v2315_v45, %v2285_v35  ;;  %v2080_v9 = vadd.f32 %v2031_v41, %v1926_v30  ;;  %v1796_v55 = vadd.f32 %v1750_v21, %v3578_v0 }
 0x29f   : > { %v2218_v58 = vadd.f32 %v2169_v25, %v2080_v9  ;;  %v1880_v31 = vpop.f32.mrf.mxu2 }
 0x2a0   : > { %v1927_v26 = vadd.f32 %v1880_v31, %v1795_v37 }
 0x2a1   : > { %v2254_v36 = vadd.f32 %v3647_v61, %v2218_v58 }
 0x2a3   : > { %v2286_v43 = vmax.f32 %v2254_v36, 0.0  ;;  %v2172_v44 = vpop.f32.mrf.mxu0 }
 0x2a4   : > { %v2034_v60 = vpop.f32.mrf.mxu3  ;;  %v1753_v4 = vpop.f32.mrf.mxu1 }
 0x2a5   : > { %v2317_v46 = vadd.f32 %v2316_v17, %v2286_v43  ;;  %v2081_v13 = vadd.f32 %v2034_v60, %v1927_v26  ;;  %v1797_v39 = vadd.f32 %v1753_v4, %v3587_v29 }
 0x2a7   : > { %v2219_v11 = vadd.f32 %v2172_v44, %v2081_v13  ;;  %v1882_v33 = vpop.f32.mrf.mxu2 }
 0x2a8   : > { %v1928_v40 = vadd.f32 %v1882_v33, %v1796_v55 }
 0x2a9   : > { %v2255_v3 = vadd.f32 %v3647_v61, %v2219_v11 }
 0x2ab   : > { %v2287_v59 = vmax.f32 %v2255_v3, 0.0  ;;  %v2174_v19 = vpop.f32.mrf.mxu0 }
 0x2ac   : > { %v2036_v56 = vpop.f32.mrf.mxu3  ;;  %v1755_v48 = vpop.f32.mrf.mxu1 }
 0x2ad   : > { %v2318_v2 = vadd.f32 %v2317_v46, %v2287_v59  ;;  %v2082_v14 = vadd.f32 %v2036_v56, %v1928_v40  ;;  %v1798_v10 = vadd.f32 %v1755_v48, %v3592_v52 }
 0x2af   : > { %v2220_v50 = vadd.f32 %v2174_v19, %v2082_v14  ;;  %v1885_v5 = vpop.f32.mrf.mxu2 }
 0x2b0   : > { %v1929_v62 = vadd.f32 %v1885_v5, %v1797_v39 }
 0x2b1   : > { %v2256_v34 = vadd.f32 %v3647_v61, %v2220_v50 }
 0x2b3   : > { %v2288_v47 = vmax.f32 %v2256_v34, 0.0  ;;  %v2177_v49 = vpop.f32.mrf.mxu0 }
 0x2b4   : > { %v2039_v0 = vpop.f32.mrf.mxu3  ;;  %v1758_v54 = vpop.f32.mrf.mxu1 }
 0x2b5   : > { %v2319_v7 = vadd.f32 %v2318_v2, %v2288_v47  ;;  %v2083_v24 = vadd.f32 %v2039_v0, %v1929_v62  ;;  %v1799_v42 = vadd.f32 %v1758_v54, %v3601_v20 }
 0x2b7   : > { %v2221_v32 = vadd.f32 %v2177_v49, %v2083_v24  ;;  %v1887_v53 = vpop.f32.mrf.mxu2 }
 0x2b8   : > { %v1930_v1 = vadd.f32 %v1887_v53, %v1798_v10 }
 0x2b9   : > { %v2257_v28 = vadd.f32 %v3647_v61, %v2221_v32 }
 0x2bb   : > { %v2289_v12 = vmax.f32 %v2257_v28, 0.0  ;;  %v2179_v57 = vpop.f32.mrf.mxu0 }
 0x2bc   : > { %v2041_v29 = vpop.f32.mrf.mxu3  ;;  %v1760_v27 = vpop.f32.mrf.mxu1 }
 0x2bd   : > { %v2320_v23 = vadd.f32 %v2319_v7, %v2289_v12  ;;  %v2084_v45 = vadd.f32 %v2041_v29, %v1930_v1  ;;  %v1800_v9 = vadd.f32 %v1760_v27, %v3606_v8 }
 0x2bf   : > { %v2222_v22 = vadd.f32 %v2179_v57, %v2084_v45  ;;  %v1890_v15 = vpop.f32.mrf.mxu2 }
 0x2c0   : > { %v1931_v38 = vadd.f32 %v1890_v15, %v1799_v42 }
 0x2c1   : > { %v2258_v16 = vadd.f32 %v3647_v61, %v2222_v22 }
 0x2c3   : > { %v2290_v30 = vmax.f32 %v2258_v16, 0.0  ;;  %v2182_v35 = vpop.f32.mrf.mxu0 }
 0x2c4   : > { %v2044_v52 = vpop.f32.mrf.mxu3  ;;  %v1763_v21 = vpop.f32.mrf.mxu1 }
 0x2c5   : > { %v2321_v25 = vadd.f32 %v2320_v23, %v2290_v30  ;;  %v2085_v41 = vadd.f32 %v2044_v52, %v1931_v38  ;;  %v1801_v4 = vadd.f32 %v1763_v21, %v3615_v51 }
 0x2c7   : > { %v2223_v17 = vadd.f32 %v2182_v35, %v2085_v41  ;;  %v1892_v58 = vpop.f32.mrf.mxu2 }
 0x2c8   : > { %v1932_v31 = vadd.f32 %v1892_v58, %v1800_v9 }
 0x2c9   : > { %v2259_v37 = vadd.f32 %v3647_v61, %v2223_v17 }
 0x2cb   : > { %v2291_v36 = vmax.f32 %v2259_v37, 0.0  ;;  %v2184_v26 = vpop.f32.mrf.mxu0 }
 0x2cc   : > { %v2046_v20 = vpop.f32.mrf.mxu3  ;;  %v1765_v13 = vpop.f32.mrf.mxu1 }
 0x2cd   : > { %v2322_v43 = vadd.f32 %v2321_v25, %v2291_v36  ;;  %v2086_v44 = vadd.f32 %v2046_v20, %v1932_v31  ;;  %v1802_v56 = vadd.f32 %v1765_v13, %v3620_v63 }
 0x2cf   : > { %v2224_v60 = vadd.f32 %v2184_v26, %v2086_v44  ;;  %v1895_v46 = vpop.f32.mrf.mxu2 }
 0x2d0   : > { %v1933_v55 = vadd.f32 %v1895_v46, %v1801_v4 }
 0x2d1   : > { %v2260_v11 = vadd.f32 %v3647_v61, %v2224_v60 }
 0x2d3   : > { %v2292_v33 = vmax.f32 %v2260_v11, 0.0  ;;  %v2187_v3 = vpop.f32.mrf.mxu0 }
 0x2d4   : > { %v2049_v8 = vpop.f32.mrf.mxu3  ;;  %v1768_v50 = vpop.f32.mrf.mxu1 }
 0x2d5   : > { %v2323_v40 = vadd.f32 %v2322_v43, %v2292_v33  ;;  %v2087_v59 = vadd.f32 %v2049_v8, %v1933_v55  ;;  %v1803_v49 = vadd.f32 %v1768_v50, %v3630_v6 }
 0x2d7   : > { %v2225_v19 = vadd.f32 %v2187_v3, %v2087_v59  ;;  %v1897_v48 = vpop.f32.mrf.mxu2 }
 0x2d8   : > { %v1934_v14 = vadd.f32 %v1897_v48, %v1802_v56 }
 0x2d9   : > { %v2261_v2 = vadd.f32 %v3647_v61, %v2225_v19 }
 0x2db   : > { %v2293_v39 = vmax.f32 %v2261_v2, 0.0  ;;  %v2189_v51 = vpop.f32.mrf.mxu0 }
 0x2dc   : > { %v2051_v5 = vpop.f32.mrf.mxu3  ;;  %v1770_v32 = vpop.f32.mrf.mxu1 }
 0x2dd   : > { %v2324_v34 = vadd.f32 %v2323_v40, %v2293_v39  ;;  %v2088_v62 = vadd.f32 %v2051_v5, %v1934_v14  ;;  %v1804_v12 = vadd.f32 %v1770_v32, %v3635_v18 }
 0x2df   : > { %v2226_v47 = vadd.f32 %v2189_v51, %v2088_v62  ;;  %v1900_v0 = vpop.f32.mrf.mxu2 }
 0x2e0   : > { %v1935_v7 = vadd.f32 %v1900_v0, %v1803_v49 }
 0x2e1   : > { %v2262_v54 = vadd.f32 %v3647_v61, %v2226_v47 }
 0x2e3   : > { %v2294_v24 = vmax.f32 %v2262_v54, 0.0  ;;  %v2192_v63 = vpop.f32.mrf.mxu0 }
 0x2e4   : > { %v2054_v10 = vpop.f32.mrf.mxu3 }
 0x2e5   : > { %v2325_v53 = vadd.f32 %v2324_v34, %v2294_v24  ;;  %v2089_v28 = vadd.f32 %v2054_v10, %v1935_v7 }
 0x2e7   : > { %v2227_v1 = vadd.f32 %v2192_v63, %v2089_v28  ;;  %v1902_v57 = vpop.f32.mrf.mxu2 }
 0x2e8   : > { %v1936_v27 = vadd.f32 %v1902_v57, %v1804_v12 }
 0x2e9   : > { %v2263_v29 = vadd.f32 %v3647_v61, %v2227_v1 }
 0x2eb   : > { %v2295_v23 = vmax.f32 %v2263_v29, 0.0  ;;  %v2194_v42 = vpop.f32.mrf.mxu0 }
 0x2ec   : > { %v2056_v6 = vpop.f32.mrf.mxu3 }
 0x2ed   : > { %v2326_v45 = vadd.f32 %v2325_v53, %v2295_v23  ;;  %v2090_v22 = vadd.f32 %v2056_v6, %v1936_v27 }
 0x2ef   : > { %v2228_v15 = vadd.f32 %v2194_v42, %v2090_v22 }
 0x2f1   : > { %v2264_v16 = vadd.f32 %v3647_v61, %v2228_v15 }
 0x2f3   : > { %v2296_v38 = vmax.f32 %v2264_v16, 0.0 }
 0x2f5   : > { %v2327_v30 = vadd.f32 %v2326_v45, %v2296_v38 }
 0x2f7   : > { %2328 = vst [vmem:[%s168_s16] sm:$0xff] %v2327_v30 }
 0x2f8 PF: > { %s13_s12 = sadd.s32 1, %s2670_s12  }
 0x2f9   : > { %p10_p4 = scmp.ge.s32.totalorder %s13_s12, 4  }
 0x2fb   :  { %12 = sbr.rel (!%p10_p4) target bundleno = 1 (0x1), region = 62 }

</bundles_post_ra>
